<compile_context>
chip_gen: v6e
topology: v6e:2x2x1
jax: 0.10.0
libtpu: 0.0.40
codegen_flags: <defaults>
</compile_context>

<pallas_src>
import functools

import jax
import jax.numpy as jnp
from jax.experimental import pallas as pl
from jax.experimental.pallas import tpu as pltpu


def _round_up(x, m):
    return ((x + m - 1) // m) * m


def _lstm_kernel(x_ref, wih_ref, whh_ref, bias_ref, h0_ref, c0_ref,   # inputs
                 hseq_ref, cfin_ref,                                  # outputs
                 gates_scr, h_scr, c_scr,                             # scratch
                 *, hidden, seq_len, t_blk, unroll, needs_mask):
    """One (batch_tile, time_block) grid step of the LSTM recurrence."""
    tb = pl.program_id(1)  # time-block index (serial axis)

    # Initialize the recurrent state from h0 / c0 at the first time block
    # of each batch tile.
    @pl.when(tb == 0)
    def _():
        h_scr[...] = h0_ref[0].astype(jnp.float32)
        c_scr[...] = c0_ref[0].astype(jnp.float32)

    # ---- Fused input projection for the whole time block --------------------
    # Off the serial path: x_t @ W_ih^T + (b_ih + b_hh) for every timestep of
    # the block, bf16 operands / f32 accumulation, result staged in VMEM.
    bias = bias_ref[...]
    for i in range(t_blk):
        gates_scr[i] = jnp.dot(x_ref[i], wih_ref[...],
                               preferred_element_type=jnp.float32) + bias

    H = hidden

    def step(i, carry):
        h_prev, c_prev = carry

        # Serial part: recurrent projection on the MXU (bf16 in, f32 acc).
        gates = gates_scr[i] + jnp.dot(
            h_prev.astype(jnp.bfloat16), whh_ref[...],
            preferred_element_type=jnp.float32)

        # sigmoid(x) = 0.5 * (tanh(0.5 x) + 1): a single EUP op per gate
        # (cheaper than the exp + reciprocal lowering, esp. on v5e).
        i_g = 0.5 * (jnp.tanh(0.5 * gates[:, 0 * H:1 * H]) + 1.0)
        f_g = 0.5 * (jnp.tanh(0.5 * gates[:, 1 * H:2 * H]) + 1.0)
        g_g = jnp.tanh(gates[:, 2 * H:3 * H])
        o_g = 0.5 * (jnp.tanh(0.5 * gates[:, 3 * H:4 * H]) + 1.0)

        c_new = f_g * c_prev + i_g * g_g
        h_new = o_g * jnp.tanh(c_new)

        if needs_mask:
            # seq_len is not a multiple of t_blk: freeze the state on padded
            # timesteps so c_final stays the value from the last real step.
            valid = (tb * t_blk + i) < seq_len
            h_new = jnp.where(valid, h_new, h_prev)
            c_new = jnp.where(valid, c_new, c_prev)

        hseq_ref[i] = h_new.astype(hseq_ref.dtype)
        return (h_new, c_new)

    h_last, c_last = jax.lax.fori_loop(
        0, t_blk, step, (h_scr[...], c_scr[...]), unroll=unroll)

    h_scr[...] = h_last
    c_scr[...] = c_last

    # Only c_final is a kernel output; h_final is h_seq[-1], sliced in the
    # wrapper. Written once, at the last time block of each batch tile.
    @pl.when(tb == pl.num_programs(1) - 1)
    def _():
        cfin_ref[0] = c_last.astype(cfin_ref.dtype)


def lstm_forward(x, params, h=None, c=None):
    """Pallas LSTM forward.

    Inputs:
      x: (seq_len, batch, input_size)
      params: dict with w_ih (4H, I), w_hh (4H, H), b_ih (4H,), b_hh (4H,)
      h, c: optional (1, batch, hidden) initial states (default zeros)

    Returns:
      (h_seq, (h_final, c_final)) with shapes
      (seq_len, batch, H), (1, batch, H), (1, batch, H)
    """
    seq_len, batch, input_size = x.shape
    w_ih = jnp.asarray(params["w_ih"], jnp.float32)   # (4H, I)
    w_hh = jnp.asarray(params["w_hh"], jnp.float32)   # (4H, H)
    b_ih = jnp.asarray(params["b_ih"], jnp.float32)   # (4H,)
    b_hh = jnp.asarray(params["b_hh"], jnp.float32)   # (4H,)
    hidden = w_hh.shape[1]
    dtype = x.dtype
    out_b = jnp.dtype(dtype).itemsize

    # ---- Padded, lane/sublane-aligned problem shape -------------------------
    h_pad = _round_up(hidden, 128)          # lane-aligned per-gate slabs
    i_pad = _round_up(input_size, 128)      # lane-aligned contraction for W_ih

    b_cap = 256 if batch >= 256 else 128    # big batches: feed the 256-wide MXU
    b_tile = min(_round_up(batch, 8), b_cap)
    # v7x has 2 TensorCores sharing the "parallel" batch axis: keep >=2 batch
    # tiles whenever the batch is big enough to split (each core gets its own
    # h/c scratch, so correctness is preserved).
    if batch >= 16 and _round_up(batch, b_tile) // b_tile < 2:
        b_tile = min(_round_up((batch + 1) // 2, 8), b_cap)
    batch_pad = _round_up(batch, b_tile)

    # ---- VMEM budget (per-generation) ---------------------------------------
    try:
        vmem_cap = pltpu.get_tpu_info().vmem_capacity_bytes
    except Exception:  # pragma: no cover - conservative fallback
        vmem_cap = 64 << 20
    budget = min(int(vmem_cap) * 3 // 4, 100 << 20)   # leave compiler headroom

    def working_set(t_blk):
        return (
            2 * t_blk * b_tile * i_pad * 2            # x block (bf16, 2 buffers)
            + i_pad * 4 * h_pad * 2                   # W_ih^T (bf16, 1 buffer)
            + h_pad * 4 * h_pad * 2                   # W_hh^T (bf16, 1 buffer)
            + 2 * 4 * h_pad * 4                       # bias
            + 2 * 2 * b_tile * h_pad * 4              # h0 / c0 blocks
            + 2 * t_blk * b_tile * h_pad * out_b      # h_seq block (2 buffers)
            + 2 * b_tile * h_pad * out_b              # c_final block
            + t_blk * b_tile * 4 * h_pad * 4          # gate-preact scratch (f32)
            + 2 * b_tile * h_pad * 4                  # h / c state scratch
        )

    t_blk = 1
    for cand in (32, 16, 8, 4, 2, 1):
        if cand <= max(seq_len, 1) and working_set(cand) <= budget:
            t_blk = cand
            break
    t_blk = max(1, min(t_blk, seq_len))
    # NOTE: for very large hidden (>~2k) W_hh should additionally be N-tiled
    # per gate rather than relying only on shrinking t_blk.
    seq_pad = _round_up(seq_len, t_blk)
    needs_mask = seq_pad != seq_len

    working = working_set(t_blk)
    vmem_limit = int(min(max(working + (4 << 20), 16 << 20), budget))

    # Per-gate zero-padding so each gate occupies its own h_pad-wide,
    # lane-aligned slab of the 4*h_pad gate axis. Zero-padded hidden units
    # stay exactly zero through the recurrence and never feed back.
    def pad_gate_rows(w):  # (4H, X) -> (4*h_pad, X)
        w4 = w.reshape(4, hidden, w.shape[-1])
        w4 = jnp.pad(w4, ((0, 0), (0, h_pad - hidden), (0, 0)))
        return w4.reshape(4 * h_pad, w.shape[-1])

    # Weights in bf16 (MXU-native); gate math stays f32.
    w_ih_t = jnp.pad(pad_gate_rows(w_ih),
                     ((0, 0), (0, i_pad - input_size))).T.astype(jnp.bfloat16)
    w_hh_t = jnp.pad(pad_gate_rows(w_hh),
                     ((0, 0), (0, h_pad - hidden))).T.astype(jnp.bfloat16)
    bias = jnp.pad((b_ih + b_hh).reshape(4, hidden),
                   ((0, 0), (0, h_pad - hidden))).reshape(1, 4 * h_pad)

    def pad_state(s):
        if s is None:
            return jnp.zeros((1, batch_pad, h_pad), jnp.float32)
        s = jnp.asarray(s, jnp.float32)[0]
        s = jnp.pad(s, ((0, batch_pad - batch), (0, h_pad - hidden)))
        return s[None]

    h0 = pad_state(h)
    c0 = pad_state(c)

    # x streamed to the kernel in bf16 (halves the HBM read of the only
    # per-timestep input stream; padded features multiply zero weight rows).
    x_p = jnp.pad(x.astype(jnp.float32),
                  ((0, seq_pad - seq_len), (0, batch_pad - batch),
                   (0, i_pad - input_size))).astype(jnp.bfloat16)

    nb = batch_pad // b_tile
    nt = seq_pad // t_blk

    # Full unroll only when the per-step gate slab is small; otherwise the
    # serially-dependent steps just inflate vreg pressure and spill.
    gate_slab_bytes = b_tile * 4 * h_pad * 4
    unroll = t_blk if gate_slab_bytes <= (256 << 10) else min(t_blk, 4)

    kernel = functools.partial(
        _lstm_kernel, hidden=h_pad, seq_len=seq_len, t_blk=t_blk,
        unroll=unroll, needs_mask=needs_mask)

    def resident(shape):
        # Constant index_map -> never re-DMA'd; single-buffer to halve VMEM.
        try:
            return pl.BlockSpec(shape, lambda b, t: (0, 0),
                                pipeline_mode=pl.Buffered(1))
        except Exception:  # pragma: no cover - older BlockSpec signature
            return pl.BlockSpec(shape, lambda b, t: (0, 0))

    grid_spec = pltpu.PrefetchScalarGridSpec(
        num_scalar_prefetch=0,
        grid=(nb, nt),
        in_specs=[
            pl.BlockSpec((t_blk, b_tile, i_pad), lambda b, t: (t, b, 0)),    # x (bf16)
            resident((i_pad, 4 * h_pad)),                                    # W_ih^T (bf16)
            resident((h_pad, 4 * h_pad)),                                    # W_hh^T (bf16)
            pl.BlockSpec((1, 4 * h_pad), lambda b, t: (0, 0)),               # bias (f32)
            pl.BlockSpec((1, b_tile, h_pad), lambda b, t: (0, b, 0)),        # h0
            pl.BlockSpec((1, b_tile, h_pad), lambda b, t: (0, b, 0)),        # c0
        ],
        out_specs=[
            pl.BlockSpec((t_blk, b_tile, h_pad), lambda b, t: (t, b, 0)),    # h_seq
            pl.BlockSpec((1, b_tile, h_pad), lambda b, t: (0, b, 0)),        # c_final
        ],
        scratch_shapes=[
            pltpu.VMEM((t_blk, b_tile, 4 * h_pad), jnp.float32),  # gate preacts
            pltpu.VMEM((b_tile, h_pad), jnp.float32),             # h state
            pltpu.VMEM((b_tile, h_pad), jnp.float32),             # c state
        ],
    )

    h_seq_p, c_fin_p = pl.pallas_call(
        kernel,
        grid_spec=grid_spec,
        out_shape=(
            jax.ShapeDtypeStruct((seq_pad, batch_pad, h_pad), dtype),
            jax.ShapeDtypeStruct((1, batch_pad, h_pad), dtype),
        ),
        compiler_params=pltpu.CompilerParams(
            dimension_semantics=("parallel", "arbitrary"),
            vmem_limit_bytes=vmem_limit,
        ),
    )(x_p, w_ih_t, w_hh_t, bias, h0, c0)

    h_seq = h_seq_p[:seq_len, :batch, :hidden]
    h_fin = h_seq[seq_len - 1:seq_len]
    c_fin = c_fin_p[:, :batch, :hidden]
    return h_seq, (h_fin, c_fin)


def lstm_reference(x, params, h=None, c=None):
    """Pure-JAX f32 reference (lax.scan), matches PyTorch nn.LSTM gate order."""
    seq_len, batch, _ = x.shape
    w_ih, w_hh = params["w_ih"], params["w_hh"]
    b_ih, b_hh = params["b_ih"], params["b_hh"]
    H = w_hh.shape[1]
    h0 = jnp.zeros((batch, H), jnp.float32) if h is None else h[0].astype(jnp.float32)
    c0 = jnp.zeros((batch, H), jnp.float32) if c is None else c[0].astype(jnp.float32)

    def step(carry, x_t):
        h_p, c_p = carry
        gates = (x_t.astype(jnp.float32) @ w_ih.T + b_ih
                 + h_p @ w_hh.T + b_hh)
        i_g = jax.nn.sigmoid(gates[:, 0 * H:1 * H])
        f_g = jax.nn.sigmoid(gates[:, 1 * H:2 * H])
        g_g = jnp.tanh(gates[:, 2 * H:3 * H])
        o_g = jax.nn.sigmoid(gates[:, 3 * H:4 * H])
        c_n = f_g * c_p + i_g * g_g
        h_n = o_g * jnp.tanh(c_n)
        return (h_n, c_n), h_n

    (h_f, c_f), h_seq = jax.lax.scan(step, (h0, c0), x)
    return h_seq, (h_f[None], c_f[None])


if __name__ == "__main__":
    seq_len, batch, input_size, hidden_size = 8, 2, 4, 32

    key = jax.random.PRNGKey(0)
    kx, k1, k2, k3, k4 = jax.random.split(key, 5)

    # Deterministic parameter init, mirroring nn.LSTM's U(-1/sqrt(H), 1/sqrt(H)).
    bound = 1.0 / jnp.sqrt(jnp.float32(hidden_size))
    params = {
        "w_ih": jax.random.uniform(k1, (4 * hidden_size, input_size),
                                   jnp.float32, -bound, bound),
        "w_hh": jax.random.uniform(k2, (4 * hidden_size, hidden_size),
                                   jnp.float32, -bound, bound),
        "b_ih": jax.random.uniform(k3, (4 * hidden_size,),
                                   jnp.float32, -bound, bound),
        "b_hh": jax.random.uniform(k4, (4 * hidden_size,),
                                   jnp.float32, -bound, bound),
    }

    x = jax.random.normal(kx, (seq_len, batch, input_size), jnp.float32)

    fwd = jax.jit(lstm_forward)
    h_seq, (h_fin, c_fin) = fwd(x, params)
    jax.block_until_ready((h_seq, h_fin, c_fin))

    # Validate against the pure-JAX f32 reference. Tolerance accounts for the
    # bf16 operands on both GEMMs in the kernel (f32 accumulation).
    h_seq_ref, (h_ref, c_ref) = lstm_reference(x, params)
    assert h_seq.shape == (seq_len, batch, hidden_size)
    assert h_fin.shape == (1, batch, hidden_size)
    assert c_fin.shape == (1, batch, hidden_size)
    assert jnp.allclose(h_seq, h_seq_ref, atol=2e-2, rtol=2e-2)
    assert jnp.allclose(h_fin, h_ref, atol=2e-2, rtol=2e-2)
    assert jnp.allclose(c_fin, c_ref, atol=2e-2, rtol=2e-2)

    print("KERNEL_OK")
</pallas_src>

<mosaic_0001>
module attributes {stable_mosaic.version = 11 : i64} {
  func.func @_lstm_kernel(%arg0: i32, %arg1: i32, %arg2: memref<8x8x128xbf16, #tpu.memory_space<vmem>>, %arg3: memref<128x512xbf16, #tpu.memory_space<vmem>>, %arg4: memref<128x512xbf16, #tpu.memory_space<vmem>>, %arg5: memref<1x512xf32, #tpu.memory_space<vmem>>, %arg6: memref<1x8x128xf32, #tpu.memory_space<vmem>>, %arg7: memref<1x8x128xf32, #tpu.memory_space<vmem>>, %arg8: memref<8x8x128xf32, #tpu.memory_space<vmem>>, %arg9: memref<1x8x128xf32, #tpu.memory_space<vmem>>, %arg10: memref<8x8x512xf32, #tpu.memory_space<vmem>>, %arg11: memref<8x128xf32, #tpu.memory_space<vmem>>, %arg12: memref<8x128xf32, #tpu.memory_space<vmem>>) attributes {dimension_semantics = [#tpu.dimension_semantics<parallel>, #tpu.dimension_semantics<arbitrary>], iteration_bounds = array<i64: 1, 1>, scalar_prefetch = 0 : i64, scratch_operands = 3 : i64, tpu.core_type = #tpu.core_type<tc>, window_params = [{transform_indices = @transform_0, window_bounds = array<i64: 8, 8, 128>}, {pipeline_mode = #tpu.pipeline_mode<synchronous>, transform_indices = @transform_1, window_bounds = array<i64: 128, 512>}, {pipeline_mode = #tpu.pipeline_mode<synchronous>, transform_indices = @transform_2, window_bounds = array<i64: 128, 512>}, {pipeline_mode = #tpu.pipeline_mode<synchronous>, transform_indices = @transform_3, window_bounds = array<i64: 1, 512>}, {transform_indices = @transform_4, window_bounds = array<i64: 1, 8, 128>}, {transform_indices = @transform_5, window_bounds = array<i64: 1, 8, 128>}, {transform_indices = @transform_6, window_bounds = array<i64: 8, 8, 128>}, {transform_indices = @transform_7, window_bounds = array<i64: 1, 8, 128>}]} {
    %c0_i32 = arith.constant 0 : i32
    %0 = arith.cmpi eq, %arg1, %c0_i32 : i32
    %1 = arith.extui %0 : i1 to i32
    %c0_i32_0 = arith.constant 0 : i32
    %2 = arith.cmpi ne, %1, %c0_i32_0 : i32
    scf.if %2 {
      %c0_205 = arith.constant 0 : index
      %c0_206 = arith.constant 0 : index
      %c0_207 = arith.constant 0 : index
      %419 = vector.load %arg6[%c0_205, %c0_206, %c0_207] : memref<1x8x128xf32, #tpu.memory_space<vmem>>, vector<1x8x128xf32>
      %420 = vector.shape_cast %419 : vector<1x8x128xf32> to vector<8x128xf32>
      %c0_208 = arith.constant 0 : index
      %c0_209 = arith.constant 0 : index
      %421 = vector.load %arg11[%c0_208, %c0_209] : memref<8x128xf32, #tpu.memory_space<vmem>>, vector<8x128xf32>
      tpu.vector_store %arg11[%c0_208, %c0_209], %420 {strides = array<i32>} : memref<8x128xf32, #tpu.memory_space<vmem>>, vector<8x128xf32>,
      %c0_210 = arith.constant 0 : index
      %c0_211 = arith.constant 0 : index
      %c0_212 = arith.constant 0 : index
      %422 = vector.load %arg7[%c0_210, %c0_211, %c0_212] : memref<1x8x128xf32, #tpu.memory_space<vmem>>, vector<1x8x128xf32>
      %423 = vector.shape_cast %422 : vector<1x8x128xf32> to vector<8x128xf32>
      %c0_213 = arith.constant 0 : index
      %c0_214 = arith.constant 0 : index
      %424 = vector.load %arg12[%c0_213, %c0_214] : memref<8x128xf32, #tpu.memory_space<vmem>>, vector<8x128xf32>
      tpu.vector_store %arg12[%c0_213, %c0_214], %423 {strides = array<i32>} : memref<8x128xf32, #tpu.memory_space<vmem>>, vector<8x128xf32>,
    } else {
    }
    %c0 = arith.constant 0 : index
    %c0_1 = arith.constant 0 : index
    %3 = vector.load %arg5[%c0, %c0_1] : memref<1x512xf32, #tpu.memory_space<vmem>>, vector<1x512xf32>
    %c0_2 = arith.constant 0 : index
    %c0_3 = arith.constant 0 : index
    %c0_4 = arith.constant 0 : index
    %4 = vector.load %arg2[%c0_2, %c0_3, %c0_4] : memref<8x8x128xbf16, #tpu.memory_space<vmem>>, vector<1x8x128xbf16>
    %5 = vector.shape_cast %4 : vector<1x8x128xbf16> to vector<8x128xbf16>
    %c0_5 = arith.constant 0 : index
    %c0_6 = arith.constant 0 : index
    %6 = vector.load %arg3[%c0_5, %c0_6] : memref<128x512xbf16, #tpu.memory_space<vmem>>, vector<128x512xbf16>
    %cst = arith.constant dense<0.000000e+00> : vector<8x512xf32>
    %7 = tpu.matmul %5, %6, %cst {dimension_numbers = #tpu.dot_dimension_numbers<[1], [0], [0], [1], [0, 0, 1, 1], [], []>} : vector<8x128xbf16>, vector<128x512xbf16>, vector<8x512xf32> -> vector<8x512xf32>
    %8 = vector.broadcast %3 : vector<1x512xf32> to vector<8x512xf32>
    %9 = arith.addf %7, %8 : vector<8x512xf32>
    %c0_7 = arith.constant 0 : index
    %c0_8 = arith.constant 0 : index
    %c0_9 = arith.constant 0 : index
    %10 = vector.load %arg10[%c0_7, %c0_8, %c0_9] : memref<8x8x512xf32, #tpu.memory_space<vmem>>, vector<1x8x512xf32>
    %11 = vector.shape_cast %10 : vector<1x8x512xf32> to vector<8x512xf32>
    %12 = vector.shape_cast %9 : vector<8x512xf32> to vector<1x8x512xf32>
    tpu.vector_store %arg10[%c0_7, %c0_8, %c0_9], %12 {strides = array<i32>} : memref<8x8x512xf32, #tpu.memory_space<vmem>>, vector<1x8x512xf32>,
    %c1 = arith.constant 1 : index
    %c0_10 = arith.constant 0 : index
    %c0_11 = arith.constant 0 : index
    %13 = vector.load %arg2[%c1, %c0_10, %c0_11] : memref<8x8x128xbf16, #tpu.memory_space<vmem>>, vector<1x8x128xbf16>
    %14 = vector.shape_cast %13 : vector<1x8x128xbf16> to vector<8x128xbf16>
    %c0_12 = arith.constant 0 : index
    %c0_13 = arith.constant 0 : index
    %15 = vector.load %arg3[%c0_12, %c0_13] : memref<128x512xbf16, #tpu.memory_space<vmem>>, vector<128x512xbf16>
    %cst_14 = arith.constant dense<0.000000e+00> : vector<8x512xf32>
    %16 = tpu.matmul %14, %15, %cst_14 {dimension_numbers = #tpu.dot_dimension_numbers<[1], [0], [0], [1], [0, 0, 1, 1], [], []>} : vector<8x128xbf16>, vector<128x512xbf16>, vector<8x512xf32> -> vector<8x512xf32>
    %17 = vector.broadcast %3 : vector<1x512xf32> to vector<8x512xf32>
    %18 = arith.addf %16, %17 : vector<8x512xf32>
    %c1_15 = arith.constant 1 : index
    %c0_16 = arith.constant 0 : index
    %c0_17 = arith.constant 0 : index
    %19 = vector.load %arg10[%c1_15, %c0_16, %c0_17] : memref<8x8x512xf32, #tpu.memory_space<vmem>>, vector<1x8x512xf32>
    %20 = vector.shape_cast %19 : vector<1x8x512xf32> to vector<8x512xf32>
    %21 = vector.shape_cast %18 : vector<8x512xf32> to vector<1x8x512xf32>
    tpu.vector_store %arg10[%c1_15, %c0_16, %c0_17], %21 {strides = array<i32>} : memref<8x8x512xf32, #tpu.memory_space<vmem>>, vector<1x8x512xf32>,
    %c2 = arith.constant 2 : index
    %c0_18 = arith.constant 0 : index
    %c0_19 = arith.constant 0 : index
    %22 = vector.load %arg2[%c2, %c0_18, %c0_19] : memref<8x8x128xbf16, #tpu.memory_space<vmem>>, vector<1x8x128xbf16>
    %23 = vector.shape_cast %22 : vector<1x8x128xbf16> to vector<8x128xbf16>
    %c0_20 = arith.constant 0 : index
    %c0_21 = arith.constant 0 : index
    %24 = vector.load %arg3[%c0_20, %c0_21] : memref<128x512xbf16, #tpu.memory_space<vmem>>, vector<128x512xbf16>
    %cst_22 = arith.constant dense<0.000000e+00> : vector<8x512xf32>
    %25 = tpu.matmul %23, %24, %cst_22 {dimension_numbers = #tpu.dot_dimension_numbers<[1], [0], [0], [1], [0, 0, 1, 1], [], []>} : vector<8x128xbf16>, vector<128x512xbf16>, vector<8x512xf32> -> vector<8x512xf32>
    %26 = vector.broadcast %3 : vector<1x512xf32> to vector<8x512xf32>
    %27 = arith.addf %25, %26 : vector<8x512xf32>
    %c2_23 = arith.constant 2 : index
    %c0_24 = arith.constant 0 : index
    %c0_25 = arith.constant 0 : index
    %28 = vector.load %arg10[%c2_23, %c0_24, %c0_25] : memref<8x8x512xf32, #tpu.memory_space<vmem>>, vector<1x8x512xf32>
    %29 = vector.shape_cast %28 : vector<1x8x512xf32> to vector<8x512xf32>
    %30 = vector.shape_cast %27 : vector<8x512xf32> to vector<1x8x512xf32>
    tpu.vector_store %arg10[%c2_23, %c0_24, %c0_25], %30 {strides = array<i32>} : memref<8x8x512xf32, #tpu.memory_space<vmem>>, vector<1x8x512xf32>,
    %c3 = arith.constant 3 : index
    %c0_26 = arith.constant 0 : index
    %c0_27 = arith.constant 0 : index
    %31 = vector.load %arg2[%c3, %c0_26, %c0_27] : memref<8x8x128xbf16, #tpu.memory_space<vmem>>, vector<1x8x128xbf16>
    %32 = vector.shape_cast %31 : vector<1x8x128xbf16> to vector<8x128xbf16>
    %c0_28 = arith.constant 0 : index
    %c0_29 = arith.constant 0 : index
    %33 = vector.load %arg3[%c0_28, %c0_29] : memref<128x512xbf16, #tpu.memory_space<vmem>>, vector<128x512xbf16>
    %cst_30 = arith.constant dense<0.000000e+00> : vector<8x512xf32>
    %34 = tpu.matmul %32, %33, %cst_30 {dimension_numbers = #tpu.dot_dimension_numbers<[1], [0], [0], [1], [0, 0, 1, 1], [], []>} : vector<8x128xbf16>, vector<128x512xbf16>, vector<8x512xf32> -> vector<8x512xf32>
    %35 = vector.broadcast %3 : vector<1x512xf32> to vector<8x512xf32>
    %36 = arith.addf %34, %35 : vector<8x512xf32>
    %c3_31 = arith.constant 3 : index
    %c0_32 = arith.constant 0 : index
    %c0_33 = arith.constant 0 : index
    %37 = vector.load %arg10[%c3_31, %c0_32, %c0_33] : memref<8x8x512xf32, #tpu.memory_space<vmem>>, vector<1x8x512xf32>
    %38 = vector.shape_cast %37 : vector<1x8x512xf32> to vector<8x512xf32>
    %39 = vector.shape_cast %36 : vector<8x512xf32> to vector<1x8x512xf32>
    tpu.vector_store %arg10[%c3_31, %c0_32, %c0_33], %39 {strides = array<i32>} : memref<8x8x512xf32, #tpu.memory_space<vmem>>, vector<1x8x512xf32>,
    %c4 = arith.constant 4 : index
    %c0_34 = arith.constant 0 : index
    %c0_35 = arith.constant 0 : index
    %40 = vector.load %arg2[%c4, %c0_34, %c0_35] : memref<8x8x128xbf16, #tpu.memory_space<vmem>>, vector<1x8x128xbf16>
    %41 = vector.shape_cast %40 : vector<1x8x128xbf16> to vector<8x128xbf16>
    %c0_36 = arith.constant 0 : index
    %c0_37 = arith.constant 0 : index
    %42 = vector.load %arg3[%c0_36, %c0_37] : memref<128x512xbf16, #tpu.memory_space<vmem>>, vector<128x512xbf16>
    %cst_38 = arith.constant dense<0.000000e+00> : vector<8x512xf32>
    %43 = tpu.matmul %41, %42, %cst_38 {dimension_numbers = #tpu.dot_dimension_numbers<[1], [0], [0], [1], [0, 0, 1, 1], [], []>} : vector<8x128xbf16>, vector<128x512xbf16>, vector<8x512xf32> -> vector<8x512xf32>
    %44 = vector.broadcast %3 : vector<1x512xf32> to vector<8x512xf32>
    %45 = arith.addf %43, %44 : vector<8x512xf32>
    %c4_39 = arith.constant 4 : index
    %c0_40 = arith.constant 0 : index
    %c0_41 = arith.constant 0 : index
    %46 = vector.load %arg10[%c4_39, %c0_40, %c0_41] : memref<8x8x512xf32, #tpu.memory_space<vmem>>, vector<1x8x512xf32>
    %47 = vector.shape_cast %46 : vector<1x8x512xf32> to vector<8x512xf32>
    %48 = vector.shape_cast %45 : vector<8x512xf32> to vector<1x8x512xf32>
    tpu.vector_store %arg10[%c4_39, %c0_40, %c0_41], %48 {strides = array<i32>} : memref<8x8x512xf32, #tpu.memory_space<vmem>>, vector<1x8x512xf32>,
    %c5 = arith.constant 5 : index
    %c0_42 = arith.constant 0 : index
    %c0_43 = arith.constant 0 : index
    %49 = vector.load %arg2[%c5, %c0_42, %c0_43] : memref<8x8x128xbf16, #tpu.memory_space<vmem>>, vector<1x8x128xbf16>
    %50 = vector.shape_cast %49 : vector<1x8x128xbf16> to vector<8x128xbf16>
    %c0_44 = arith.constant 0 : index
    %c0_45 = arith.constant 0 : index
    %51 = vector.load %arg3[%c0_44, %c0_45] : memref<128x512xbf16, #tpu.memory_space<vmem>>, vector<128x512xbf16>
    %cst_46 = arith.constant dense<0.000000e+00> : vector<8x512xf32>
    %52 = tpu.matmul %50, %51, %cst_46 {dimension_numbers = #tpu.dot_dimension_numbers<[1], [0], [0], [1], [0, 0, 1, 1], [], []>} : vector<8x128xbf16>, vector<128x512xbf16>, vector<8x512xf32> -> vector<8x512xf32>
    %53 = vector.broadcast %3 : vector<1x512xf32> to vector<8x512xf32>
    %54 = arith.addf %52, %53 : vector<8x512xf32>
    %c5_47 = arith.constant 5 : index
    %c0_48 = arith.constant 0 : index
    %c0_49 = arith.constant 0 : index
    %55 = vector.load %arg10[%c5_47, %c0_48, %c0_49] : memref<8x8x512xf32, #tpu.memory_space<vmem>>, vector<1x8x512xf32>
    %56 = vector.shape_cast %55 : vector<1x8x512xf32> to vector<8x512xf32>
    %57 = vector.shape_cast %54 : vector<8x512xf32> to vector<1x8x512xf32>
    tpu.vector_store %arg10[%c5_47, %c0_48, %c0_49], %57 {strides = array<i32>} : memref<8x8x512xf32, #tpu.memory_space<vmem>>, vector<1x8x512xf32>,
    %c6 = arith.constant 6 : index
    %c0_50 = arith.constant 0 : index
    %c0_51 = arith.constant 0 : index
    %58 = vector.load %arg2[%c6, %c0_50, %c0_51] : memref<8x8x128xbf16, #tpu.memory_space<vmem>>, vector<1x8x128xbf16>
    %59 = vector.shape_cast %58 : vector<1x8x128xbf16> to vector<8x128xbf16>
    %c0_52 = arith.constant 0 : index
    %c0_53 = arith.constant 0 : index
    %60 = vector.load %arg3[%c0_52, %c0_53] : memref<128x512xbf16, #tpu.memory_space<vmem>>, vector<128x512xbf16>
    %cst_54 = arith.constant dense<0.000000e+00> : vector<8x512xf32>
    %61 = tpu.matmul %59, %60, %cst_54 {dimension_numbers = #tpu.dot_dimension_numbers<[1], [0], [0], [1], [0, 0, 1, 1], [], []>} : vector<8x128xbf16>, vector<128x512xbf16>, vector<8x512xf32> -> vector<8x512xf32>
    %62 = vector.broadcast %3 : vector<1x512xf32> to vector<8x512xf32>
    %63 = arith.addf %61, %62 : vector<8x512xf32>
    %c6_55 = arith.constant 6 : index
    %c0_56 = arith.constant 0 : index
    %c0_57 = arith.constant 0 : index
    %64 = vector.load %arg10[%c6_55, %c0_56, %c0_57] : memref<8x8x512xf32, #tpu.memory_space<vmem>>, vector<1x8x512xf32>
    %65 = vector.shape_cast %64 : vector<1x8x512xf32> to vector<8x512xf32>
    %66 = vector.shape_cast %63 : vector<8x512xf32> to vector<1x8x512xf32>
    tpu.vector_store %arg10[%c6_55, %c0_56, %c0_57], %66 {strides = array<i32>} : memref<8x8x512xf32, #tpu.memory_space<vmem>>, vector<1x8x512xf32>,
    %c7 = arith.constant 7 : index
    %c0_58 = arith.constant 0 : index
    %c0_59 = arith.constant 0 : index
    %67 = vector.load %arg2[%c7, %c0_58, %c0_59] : memref<8x8x128xbf16, #tpu.memory_space<vmem>>, vector<1x8x128xbf16>
    %68 = vector.shape_cast %67 : vector<1x8x128xbf16> to vector<8x128xbf16>
    %c0_60 = arith.constant 0 : index
    %c0_61 = arith.constant 0 : index
    %69 = vector.load %arg3[%c0_60, %c0_61] : memref<128x512xbf16, #tpu.memory_space<vmem>>, vector<128x512xbf16>
    %cst_62 = arith.constant dense<0.000000e+00> : vector<8x512xf32>
    %70 = tpu.matmul %68, %69, %cst_62 {dimension_numbers = #tpu.dot_dimension_numbers<[1], [0], [0], [1], [0, 0, 1, 1], [], []>} : vector<8x128xbf16>, vector<128x512xbf16>, vector<8x512xf32> -> vector<8x512xf32>
    %71 = vector.broadcast %3 : vector<1x512xf32> to vector<8x512xf32>
    %72 = arith.addf %70, %71 : vector<8x512xf32>
    %c7_63 = arith.constant 7 : index
    %c0_64 = arith.constant 0 : index
    %c0_65 = arith.constant 0 : index
    %73 = vector.load %arg10[%c7_63, %c0_64, %c0_65] : memref<8x8x512xf32, #tpu.memory_space<vmem>>, vector<1x8x512xf32>
    %74 = vector.shape_cast %73 : vector<1x8x512xf32> to vector<8x512xf32>
    %75 = vector.shape_cast %72 : vector<8x512xf32> to vector<1x8x512xf32>
    tpu.vector_store %arg10[%c7_63, %c0_64, %c0_65], %75 {strides = array<i32>} : memref<8x8x512xf32, #tpu.memory_space<vmem>>, vector<1x8x512xf32>,
    %c0_66 = arith.constant 0 : index
    %c0_67 = arith.constant 0 : index
    %76 = vector.load %arg11[%c0_66, %c0_67] : memref<8x128xf32, #tpu.memory_space<vmem>>, vector<8x128xf32>
    %c0_68 = arith.constant 0 : index
    %c0_69 = arith.constant 0 : index
    %77 = vector.load %arg12[%c0_68, %c0_69] : memref<8x128xf32, #tpu.memory_space<vmem>>, vector<8x128xf32>
    %c0_i32_70 = arith.constant 0 : i32
    %78 = arith.index_cast %c0_i32_70 : i32 to index
    %c0_71 = arith.constant 0 : index
    %c0_72 = arith.constant 0 : index
    %79 = vector.load %arg10[%78, %c0_71, %c0_72] : memref<8x8x512xf32, #tpu.memory_space<vmem>>, vector<1x8x512xf32>
    %80 = vector.shape_cast %79 : vector<1x8x512xf32> to vector<8x512xf32>
    %81 = arith.truncf %76 : vector<8x128xf32> to vector<8x128xbf16>
    %c0_73 = arith.constant 0 : index
    %c0_74 = arith.constant 0 : index
    %82 = vector.load %arg4[%c0_73, %c0_74] : memref<128x512xbf16, #tpu.memory_space<vmem>>, vector<128x512xbf16>
    %cst_75 = arith.constant dense<0.000000e+00> : vector<8x512xf32>
    %83 = tpu.matmul %81, %82, %cst_75 {dimension_numbers = #tpu.dot_dimension_numbers<[1], [0], [0], [1], [0, 0, 1, 1], [], []>} : vector<8x128xbf16>, vector<128x512xbf16>, vector<8x512xf32> -> vector<8x512xf32>
    %84 = arith.addf %80, %83 : vector<8x512xf32>
    %85 = vector.extract_strided_slice %84 {offsets = [0, 0], sizes = [8, 128], strides = [1, 1]} : vector<8x512xf32> to vector<8x128xf32>
    %cst_76 = arith.constant 5.000000e-01 : f32
    %86 = vector.broadcast %cst_76 : f32 to vector<8x128xf32>
    %87 = arith.mulf %86, %85 : vector<8x128xf32>
    %88 = math.tanh %87 : vector<8x128xf32>
    %cst_77 = arith.constant 1.000000e+00 : f32
    %89 = vector.broadcast %cst_77 : f32 to vector<8x128xf32>
    %90 = arith.addf %88, %89 : vector<8x128xf32>
    %cst_78 = arith.constant 5.000000e-01 : f32
    %91 = vector.broadcast %cst_78 : f32 to vector<8x128xf32>
    %92 = arith.mulf %91, %90 : vector<8x128xf32>
    %93 = vector.extract_strided_slice %84 {offsets = [0, 128], sizes = [8, 128], strides = [1, 1]} : vector<8x512xf32> to vector<8x128xf32>
    %cst_79 = arith.constant 5.000000e-01 : f32
    %94 = vector.broadcast %cst_79 : f32 to vector<8x128xf32>
    %95 = arith.mulf %94, %93 : vector<8x128xf32>
    %96 = math.tanh %95 : vector<8x128xf32>
    %cst_80 = arith.constant 1.000000e+00 : f32
    %97 = vector.broadcast %cst_80 : f32 to vector<8x128xf32>
    %98 = arith.addf %96, %97 : vector<8x128xf32>
    %cst_81 = arith.constant 5.000000e-01 : f32
    %99 = vector.broadcast %cst_81 : f32 to vector<8x128xf32>
    %100 = arith.mulf %99, %98 : vector<8x128xf32>
    %101 = vector.extract_strided_slice %84 {offsets = [0, 256], sizes = [8, 128], strides = [1, 1]} : vector<8x512xf32> to vector<8x128xf32>
    %102 = math.tanh %101 : vector<8x128xf32>
    %103 = vector.extract_strided_slice %84 {offsets = [0, 384], sizes = [8, 128], strides = [1, 1]} : vector<8x512xf32> to vector<8x128xf32>
    %cst_82 = arith.constant 5.000000e-01 : f32
    %104 = vector.broadcast %cst_82 : f32 to vector<8x128xf32>
    %105 = arith.mulf %104, %103 : vector<8x128xf32>
    %106 = math.tanh %105 : vector<8x128xf32>
    %cst_83 = arith.constant 1.000000e+00 : f32
    %107 = vector.broadcast %cst_83 : f32 to vector<8x128xf32>
    %108 = arith.addf %106, %107 : vector<8x128xf32>
    %cst_84 = arith.constant 5.000000e-01 : f32
    %109 = vector.broadcast %cst_84 : f32 to vector<8x128xf32>
    %110 = arith.mulf %109, %108 : vector<8x128xf32>
    %111 = arith.mulf %100, %77 : vector<8x128xf32>
    %112 = arith.mulf %92, %102 : vector<8x128xf32>
    %113 = arith.addf %111, %112 : vector<8x128xf32>
    %114 = math.tanh %113 : vector<8x128xf32>
    %115 = arith.mulf %110, %114 : vector<8x128xf32>
    %116 = arith.index_cast %c0_i32_70 : i32 to index
    %c0_85 = arith.constant 0 : index
    %c0_86 = arith.constant 0 : index
    %117 = vector.load %arg8[%116, %c0_85, %c0_86] : memref<8x8x128xf32, #tpu.memory_space<vmem>>, vector<1x8x128xf32>
    %118 = vector.shape_cast %117 : vector<1x8x128xf32> to vector<8x128xf32>
    %119 = vector.shape_cast %115 : vector<8x128xf32> to vector<1x8x128xf32>
    tpu.vector_store %arg8[%116, %c0_85, %c0_86], %119 {strides = array<i32>} : memref<8x8x128xf32, #tpu.memory_space<vmem>>, vector<1x8x128xf32>,
    %c1_i32 = arith.constant 1 : i32
    %120 = arith.index_cast %c1_i32 : i32 to index
    %c0_87 = arith.constant 0 : index
    %c0_88 = arith.constant 0 : index
    %121 = vector.load %arg10[%120, %c0_87, %c0_88] : memref<8x8x512xf32, #tpu.memory_space<vmem>>, vector<1x8x512xf32>
    %122 = vector.shape_cast %121 : vector<1x8x512xf32> to vector<8x512xf32>
    %123 = arith.truncf %115 : vector<8x128xf32> to vector<8x128xbf16>
    %c0_89 = arith.constant 0 : index
    %c0_90 = arith.constant 0 : index
    %124 = vector.load %arg4[%c0_89, %c0_90] : memref<128x512xbf16, #tpu.memory_space<vmem>>, vector<128x512xbf16>
    %cst_91 = arith.constant dense<0.000000e+00> : vector<8x512xf32>
    %125 = tpu.matmul %123, %124, %cst_91 {dimension_numbers = #tpu.dot_dimension_numbers<[1], [0], [0], [1], [0, 0, 1, 1], [], []>} : vector<8x128xbf16>, vector<128x512xbf16>, vector<8x512xf32> -> vector<8x512xf32>
    %126 = arith.addf %122, %125 : vector<8x512xf32>
    %127 = vector.extract_strided_slice %126 {offsets = [0, 0], sizes = [8, 128], strides = [1, 1]} : vector<8x512xf32> to vector<8x128xf32>
    %cst_92 = arith.constant 5.000000e-01 : f32
    %128 = vector.broadcast %cst_92 : f32 to vector<8x128xf32>
    %129 = arith.mulf %128, %127 : vector<8x128xf32>
    %130 = math.tanh %129 : vector<8x128xf32>
    %cst_93 = arith.constant 1.000000e+00 : f32
    %131 = vector.broadcast %cst_93 : f32 to vector<8x128xf32>
    %132 = arith.addf %130, %131 : vector<8x128xf32>
    %cst_94 = arith.constant 5.000000e-01 : f32
    %133 = vector.broadcast %cst_94 : f32 to vector<8x128xf32>
    %134 = arith.mulf %133, %132 : vector<8x128xf32>
    %135 = vector.extract_strided_slice %126 {offsets = [0, 128], sizes = [8, 128], strides = [1, 1]} : vector<8x512xf32> to vector<8x128xf32>
    %cst_95 = arith.constant 5.000000e-01 : f32
    %136 = vector.broadcast %cst_95 : f32 to vector<8x128xf32>
    %137 = arith.mulf %136, %135 : vector<8x128xf32>
    %138 = math.tanh %137 : vector<8x128xf32>
    %cst_96 = arith.constant 1.000000e+00 : f32
    %139 = vector.broadcast %cst_96 : f32 to vector<8x128xf32>
    %140 = arith.addf %138, %139 : vector<8x128xf32>
    %cst_97 = arith.constant 5.000000e-01 : f32
    %141 = vector.broadcast %cst_97 : f32 to vector<8x128xf32>
    %142 = arith.mulf %141, %140 : vector<8x128xf32>
    %143 = vector.extract_strided_slice %126 {offsets = [0, 256], sizes = [8, 128], strides = [1, 1]} : vector<8x512xf32> to vector<8x128xf32>
    %144 = math.tanh %143 : vector<8x128xf32>
    %145 = vector.extract_strided_slice %126 {offsets = [0, 384], sizes = [8, 128], strides = [1, 1]} : vector<8x512xf32> to vector<8x128xf32>
    %cst_98 = arith.constant 5.000000e-01 : f32
    %146 = vector.broadcast %cst_98 : f32 to vector<8x128xf32>
    %147 = arith.mulf %146, %145 : vector<8x128xf32>
    %148 = math.tanh %147 : vector<8x128xf32>
    %cst_99 = arith.constant 1.000000e+00 : f32
    %149 = vector.broadcast %cst_99 : f32 to vector<8x128xf32>
    %150 = arith.addf %148, %149 : vector<8x128xf32>
    %cst_100 = arith.constant 5.000000e-01 : f32
    %151 = vector.broadcast %cst_100 : f32 to vector<8x128xf32>
    %152 = arith.mulf %151, %150 : vector<8x128xf32>
    %153 = arith.mulf %142, %113 : vector<8x128xf32>
    %154 = arith.mulf %134, %144 : vector<8x128xf32>
    %155 = arith.addf %153, %154 : vector<8x128xf32>
    %156 = math.tanh %155 : vector<8x128xf32>
    %157 = arith.mulf %152, %156 : vector<8x128xf32>
    %158 = arith.index_cast %c1_i32 : i32 to index
    %c0_101 = arith.constant 0 : index
    %c0_102 = arith.constant 0 : index
    %159 = vector.load %arg8[%158, %c0_101, %c0_102] : memref<8x8x128xf32, #tpu.memory_space<vmem>>, vector<1x8x128xf32>
    %160 = vector.shape_cast %159 : vector<1x8x128xf32> to vector<8x128xf32>
    %161 = vector.shape_cast %157 : vector<8x128xf32> to vector<1x8x128xf32>
    tpu.vector_store %arg8[%158, %c0_101, %c0_102], %161 {strides = array<i32>} : memref<8x8x128xf32, #tpu.memory_space<vmem>>, vector<1x8x128xf32>,
    %c2_i32 = arith.constant 2 : i32
    %162 = arith.index_cast %c2_i32 : i32 to index
    %c0_103 = arith.constant 0 : index
    %c0_104 = arith.constant 0 : index
    %163 = vector.load %arg10[%162, %c0_103, %c0_104] : memref<8x8x512xf32, #tpu.memory_space<vmem>>, vector<1x8x512xf32>
    %164 = vector.shape_cast %163 : vector<1x8x512xf32> to vector<8x512xf32>
    %165 = arith.truncf %157 : vector<8x128xf32> to vector<8x128xbf16>
    %c0_105 = arith.constant 0 : index
    %c0_106 = arith.constant 0 : index
    %166 = vector.load %arg4[%c0_105, %c0_106] : memref<128x512xbf16, #tpu.memory_space<vmem>>, vector<128x512xbf16>
    %cst_107 = arith.constant dense<0.000000e+00> : vector<8x512xf32>
    %167 = tpu.matmul %165, %166, %cst_107 {dimension_numbers = #tpu.dot_dimension_numbers<[1], [0], [0], [1], [0, 0, 1, 1], [], []>} : vector<8x128xbf16>, vector<128x512xbf16>, vector<8x512xf32> -> vector<8x512xf32>
    %168 = arith.addf %164, %167 : vector<8x512xf32>
    %169 = vector.extract_strided_slice %168 {offsets = [0, 0], sizes = [8, 128], strides = [1, 1]} : vector<8x512xf32> to vector<8x128xf32>
    %cst_108 = arith.constant 5.000000e-01 : f32
    %170 = vector.broadcast %cst_108 : f32 to vector<8x128xf32>
    %171 = arith.mulf %170, %169 : vector<8x128xf32>
    %172 = math.tanh %171 : vector<8x128xf32>
    %cst_109 = arith.constant 1.000000e+00 : f32
    %173 = vector.broadcast %cst_109 : f32 to vector<8x128xf32>
    %174 = arith.addf %172, %173 : vector<8x128xf32>
    %cst_110 = arith.constant 5.000000e-01 : f32
    %175 = vector.broadcast %cst_110 : f32 to vector<8x128xf32>
    %176 = arith.mulf %175, %174 : vector<8x128xf32>
    %177 = vector.extract_strided_slice %168 {offsets = [0, 128], sizes = [8, 128], strides = [1, 1]} : vector<8x512xf32> to vector<8x128xf32>
    %cst_111 = arith.constant 5.000000e-01 : f32
    %178 = vector.broadcast %cst_111 : f32 to vector<8x128xf32>
    %179 = arith.mulf %178, %177 : vector<8x128xf32>
    %180 = math.tanh %179 : vector<8x128xf32>
    %cst_112 = arith.constant 1.000000e+00 : f32
    %181 = vector.broadcast %cst_112 : f32 to vector<8x128xf32>
    %182 = arith.addf %180, %181 : vector<8x128xf32>
    %cst_113 = arith.constant 5.000000e-01 : f32
    %183 = vector.broadcast %cst_113 : f32 to vector<8x128xf32>
    %184 = arith.mulf %183, %182 : vector<8x128xf32>
    %185 = vector.extract_strided_slice %168 {offsets = [0, 256], sizes = [8, 128], strides = [1, 1]} : vector<8x512xf32> to vector<8x128xf32>
    %186 = math.tanh %185 : vector<8x128xf32>
    %187 = vector.extract_strided_slice %168 {offsets = [0, 384], sizes = [8, 128], strides = [1, 1]} : vector<8x512xf32> to vector<8x128xf32>
    %cst_114 = arith.constant 5.000000e-01 : f32
    %188 = vector.broadcast %cst_114 : f32 to vector<8x128xf32>
    %189 = arith.mulf %188, %187 : vector<8x128xf32>
    %190 = math.tanh %189 : vector<8x128xf32>
    %cst_115 = arith.constant 1.000000e+00 : f32
    %191 = vector.broadcast %cst_115 : f32 to vector<8x128xf32>
    %192 = arith.addf %190, %191 : vector<8x128xf32>
    %cst_116 = arith.constant 5.000000e-01 : f32
    %193 = vector.broadcast %cst_116 : f32 to vector<8x128xf32>
    %194 = arith.mulf %193, %192 : vector<8x128xf32>
    %195 = arith.mulf %184, %155 : vector<8x128xf32>
    %196 = arith.mulf %176, %186 : vector<8x128xf32>
    %197 = arith.addf %195, %196 : vector<8x128xf32>
    %198 = math.tanh %197 : vector<8x128xf32>
    %199 = arith.mulf %194, %198 : vector<8x128xf32>
    %200 = arith.index_cast %c2_i32 : i32 to index
    %c0_117 = arith.constant 0 : index
    %c0_118 = arith.constant 0 : index
    %201 = vector.load %arg8[%200, %c0_117, %c0_118] : memref<8x8x128xf32, #tpu.memory_space<vmem>>, vector<1x8x128xf32>
    %202 = vector.shape_cast %201 : vector<1x8x128xf32> to vector<8x128xf32>
    %203 = vector.shape_cast %199 : vector<8x128xf32> to vector<1x8x128xf32>
    tpu.vector_store %arg8[%200, %c0_117, %c0_118], %203 {strides = array<i32>} : memref<8x8x128xf32, #tpu.memory_space<vmem>>, vector<1x8x128xf32>,
    %c3_i32 = arith.constant 3 : i32
    %204 = arith.index_cast %c3_i32 : i32 to index
    %c0_119 = arith.constant 0 : index
    %c0_120 = arith.constant 0 : index
    %205 = vector.load %arg10[%204, %c0_119, %c0_120] : memref<8x8x512xf32, #tpu.memory_space<vmem>>, vector<1x8x512xf32>
    %206 = vector.shape_cast %205 : vector<1x8x512xf32> to vector<8x512xf32>
    %207 = arith.truncf %199 : vector<8x128xf32> to vector<8x128xbf16>
    %c0_121 = arith.constant 0 : index
    %c0_122 = arith.constant 0 : index
    %208 = vector.load %arg4[%c0_121, %c0_122] : memref<128x512xbf16, #tpu.memory_space<vmem>>, vector<128x512xbf16>
    %cst_123 = arith.constant dense<0.000000e+00> : vector<8x512xf32>
    %209 = tpu.matmul %207, %208, %cst_123 {dimension_numbers = #tpu.dot_dimension_numbers<[1], [0], [0], [1], [0, 0, 1, 1], [], []>} : vector<8x128xbf16>, vector<128x512xbf16>, vector<8x512xf32> -> vector<8x512xf32>
    %210 = arith.addf %206, %209 : vector<8x512xf32>
    %211 = vector.extract_strided_slice %210 {offsets = [0, 0], sizes = [8, 128], strides = [1, 1]} : vector<8x512xf32> to vector<8x128xf32>
    %cst_124 = arith.constant 5.000000e-01 : f32
    %212 = vector.broadcast %cst_124 : f32 to vector<8x128xf32>
    %213 = arith.mulf %212, %211 : vector<8x128xf32>
    %214 = math.tanh %213 : vector<8x128xf32>
    %cst_125 = arith.constant 1.000000e+00 : f32
    %215 = vector.broadcast %cst_125 : f32 to vector<8x128xf32>
    %216 = arith.addf %214, %215 : vector<8x128xf32>
    %cst_126 = arith.constant 5.000000e-01 : f32
    %217 = vector.broadcast %cst_126 : f32 to vector<8x128xf32>
    %218 = arith.mulf %217, %216 : vector<8x128xf32>
    %219 = vector.extract_strided_slice %210 {offsets = [0, 128], sizes = [8, 128], strides = [1, 1]} : vector<8x512xf32> to vector<8x128xf32>
    %cst_127 = arith.constant 5.000000e-01 : f32
    %220 = vector.broadcast %cst_127 : f32 to vector<8x128xf32>
    %221 = arith.mulf %220, %219 : vector<8x128xf32>
    %222 = math.tanh %221 : vector<8x128xf32>
    %cst_128 = arith.constant 1.000000e+00 : f32
    %223 = vector.broadcast %cst_128 : f32 to vector<8x128xf32>
    %224 = arith.addf %222, %223 : vector<8x128xf32>
    %cst_129 = arith.constant 5.000000e-01 : f32
    %225 = vector.broadcast %cst_129 : f32 to vector<8x128xf32>
    %226 = arith.mulf %225, %224 : vector<8x128xf32>
    %227 = vector.extract_strided_slice %210 {offsets = [0, 256], sizes = [8, 128], strides = [1, 1]} : vector<8x512xf32> to vector<8x128xf32>
    %228 = math.tanh %227 : vector<8x128xf32>
    %229 = vector.extract_strided_slice %210 {offsets = [0, 384], sizes = [8, 128], strides = [1, 1]} : vector<8x512xf32> to vector<8x128xf32>
    %cst_130 = arith.constant 5.000000e-01 : f32
    %230 = vector.broadcast %cst_130 : f32 to vector<8x128xf32>
    %231 = arith.mulf %230, %229 : vector<8x128xf32>
    %232 = math.tanh %231 : vector<8x128xf32>
    %cst_131 = arith.constant 1.000000e+00 : f32
    %233 = vector.broadcast %cst_131 : f32 to vector<8x128xf32>
    %234 = arith.addf %232, %233 : vector<8x128xf32>
    %cst_132 = arith.constant 5.000000e-01 : f32
    %235 = vector.broadcast %cst_132 : f32 to vector<8x128xf32>
    %236 = arith.mulf %235, %234 : vector<8x128xf32>
    %237 = arith.mulf %226, %197 : vector<8x128xf32>
    %238 = arith.mulf %218, %228 : vector<8x128xf32>
    %239 = arith.addf %237, %238 : vector<8x128xf32>
    %240 = math.tanh %239 : vector<8x128xf32>
    %241 = arith.mulf %236, %240 : vector<8x128xf32>
    %242 = arith.index_cast %c3_i32 : i32 to index
    %c0_133 = arith.constant 0 : index
    %c0_134 = arith.constant 0 : index
    %243 = vector.load %arg8[%242, %c0_133, %c0_134] : memref<8x8x128xf32, #tpu.memory_space<vmem>>, vector<1x8x128xf32>
    %244 = vector.shape_cast %243 : vector<1x8x128xf32> to vector<8x128xf32>
    %245 = vector.shape_cast %241 : vector<8x128xf32> to vector<1x8x128xf32>
    tpu.vector_store %arg8[%242, %c0_133, %c0_134], %245 {strides = array<i32>} : memref<8x8x128xf32, #tpu.memory_space<vmem>>, vector<1x8x128xf32>,
    %c4_i32 = arith.constant 4 : i32
    %246 = arith.index_cast %c4_i32 : i32 to index
    %c0_135 = arith.constant 0 : index
    %c0_136 = arith.constant 0 : index
    %247 = vector.load %arg10[%246, %c0_135, %c0_136] : memref<8x8x512xf32, #tpu.memory_space<vmem>>, vector<1x8x512xf32>
    %248 = vector.shape_cast %247 : vector<1x8x512xf32> to vector<8x512xf32>
    %249 = arith.truncf %241 : vector<8x128xf32> to vector<8x128xbf16>
    %c0_137 = arith.constant 0 : index
    %c0_138 = arith.constant 0 : index
    %250 = vector.load %arg4[%c0_137, %c0_138] : memref<128x512xbf16, #tpu.memory_space<vmem>>, vector<128x512xbf16>
    %cst_139 = arith.constant dense<0.000000e+00> : vector<8x512xf32>
    %251 = tpu.matmul %249, %250, %cst_139 {dimension_numbers = #tpu.dot_dimension_numbers<[1], [0], [0], [1], [0, 0, 1, 1], [], []>} : vector<8x128xbf16>, vector<128x512xbf16>, vector<8x512xf32> -> vector<8x512xf32>
    %252 = arith.addf %248, %251 : vector<8x512xf32>
    %253 = vector.extract_strided_slice %252 {offsets = [0, 0], sizes = [8, 128], strides = [1, 1]} : vector<8x512xf32> to vector<8x128xf32>
    %cst_140 = arith.constant 5.000000e-01 : f32
    %254 = vector.broadcast %cst_140 : f32 to vector<8x128xf32>
    %255 = arith.mulf %254, %253 : vector<8x128xf32>
    %256 = math.tanh %255 : vector<8x128xf32>
    %cst_141 = arith.constant 1.000000e+00 : f32
    %257 = vector.broadcast %cst_141 : f32 to vector<8x128xf32>
    %258 = arith.addf %256, %257 : vector<8x128xf32>
    %cst_142 = arith.constant 5.000000e-01 : f32
    %259 = vector.broadcast %cst_142 : f32 to vector<8x128xf32>
    %260 = arith.mulf %259, %258 : vector<8x128xf32>
    %261 = vector.extract_strided_slice %252 {offsets = [0, 128], sizes = [8, 128], strides = [1, 1]} : vector<8x512xf32> to vector<8x128xf32>
    %cst_143 = arith.constant 5.000000e-01 : f32
    %262 = vector.broadcast %cst_143 : f32 to vector<8x128xf32>
    %263 = arith.mulf %262, %261 : vector<8x128xf32>
    %264 = math.tanh %263 : vector<8x128xf32>
    %cst_144 = arith.constant 1.000000e+00 : f32
    %265 = vector.broadcast %cst_144 : f32 to vector<8x128xf32>
    %266 = arith.addf %264, %265 : vector<8x128xf32>
    %cst_145 = arith.constant 5.000000e-01 : f32
    %267 = vector.broadcast %cst_145 : f32 to vector<8x128xf32>
    %268 = arith.mulf %267, %266 : vector<8x128xf32>
    %269 = vector.extract_strided_slice %252 {offsets = [0, 256], sizes = [8, 128], strides = [1, 1]} : vector<8x512xf32> to vector<8x128xf32>
    %270 = math.tanh %269 : vector<8x128xf32>
    %271 = vector.extract_strided_slice %252 {offsets = [0, 384], sizes = [8, 128], strides = [1, 1]} : vector<8x512xf32> to vector<8x128xf32>
    %cst_146 = arith.constant 5.000000e-01 : f32
    %272 = vector.broadcast %cst_146 : f32 to vector<8x128xf32>
    %273 = arith.mulf %272, %271 : vector<8x128xf32>
    %274 = math.tanh %273 : vector<8x128xf32>
    %cst_147 = arith.constant 1.000000e+00 : f32
    %275 = vector.broadcast %cst_147 : f32 to vector<8x128xf32>
    %276 = arith.addf %274, %275 : vector<8x128xf32>
    %cst_148 = arith.constant 5.000000e-01 : f32
    %277 = vector.broadcast %cst_148 : f32 to vector<8x128xf32>
    %278 = arith.mulf %277, %276 : vector<8x128xf32>
    %279 = arith.mulf %268, %239 : vector<8x128xf32>
    %280 = arith.mulf %260, %270 : vector<8x128xf32>
    %281 = arith.addf %279, %280 : vector<8x128xf32>
    %282 = math.tanh %281 : vector<8x128xf32>
    %283 = arith.mulf %278, %282 : vector<8x128xf32>
    %284 = arith.index_cast %c4_i32 : i32 to index
    %c0_149 = arith.constant 0 : index
    %c0_150 = arith.constant 0 : index
    %285 = vector.load %arg8[%284, %c0_149, %c0_150] : memref<8x8x128xf32, #tpu.memory_space<vmem>>, vector<1x8x128xf32>
    %286 = vector.shape_cast %285 : vector<1x8x128xf32> to vector<8x128xf32>
    %287 = vector.shape_cast %283 : vector<8x128xf32> to vector<1x8x128xf32>
    tpu.vector_store %arg8[%284, %c0_149, %c0_150], %287 {strides = array<i32>} : memref<8x8x128xf32, #tpu.memory_space<vmem>>, vector<1x8x128xf32>,
    %c5_i32 = arith.constant 5 : i32
    %288 = arith.index_cast %c5_i32 : i32 to index
    %c0_151 = arith.constant 0 : index
    %c0_152 = arith.constant 0 : index
    %289 = vector.load %arg10[%288, %c0_151, %c0_152] : memref<8x8x512xf32, #tpu.memory_space<vmem>>, vector<1x8x512xf32>
    %290 = vector.shape_cast %289 : vector<1x8x512xf32> to vector<8x512xf32>
    %291 = arith.truncf %283 : vector<8x128xf32> to vector<8x128xbf16>
    %c0_153 = arith.constant 0 : index
    %c0_154 = arith.constant 0 : index
    %292 = vector.load %arg4[%c0_153, %c0_154] : memref<128x512xbf16, #tpu.memory_space<vmem>>, vector<128x512xbf16>
    %cst_155 = arith.constant dense<0.000000e+00> : vector<8x512xf32>
    %293 = tpu.matmul %291, %292, %cst_155 {dimension_numbers = #tpu.dot_dimension_numbers<[1], [0], [0], [1], [0, 0, 1, 1], [], []>} : vector<8x128xbf16>, vector<128x512xbf16>, vector<8x512xf32> -> vector<8x512xf32>
    %294 = arith.addf %290, %293 : vector<8x512xf32>
    %295 = vector.extract_strided_slice %294 {offsets = [0, 0], sizes = [8, 128], strides = [1, 1]} : vector<8x512xf32> to vector<8x128xf32>
    %cst_156 = arith.constant 5.000000e-01 : f32
    %296 = vector.broadcast %cst_156 : f32 to vector<8x128xf32>
    %297 = arith.mulf %296, %295 : vector<8x128xf32>
    %298 = math.tanh %297 : vector<8x128xf32>
    %cst_157 = arith.constant 1.000000e+00 : f32
    %299 = vector.broadcast %cst_157 : f32 to vector<8x128xf32>
    %300 = arith.addf %298, %299 : vector<8x128xf32>
    %cst_158 = arith.constant 5.000000e-01 : f32
    %301 = vector.broadcast %cst_158 : f32 to vector<8x128xf32>
    %302 = arith.mulf %301, %300 : vector<8x128xf32>
    %303 = vector.extract_strided_slice %294 {offsets = [0, 128], sizes = [8, 128], strides = [1, 1]} : vector<8x512xf32> to vector<8x128xf32>
    %cst_159 = arith.constant 5.000000e-01 : f32
    %304 = vector.broadcast %cst_159 : f32 to vector<8x128xf32>
    %305 = arith.mulf %304, %303 : vector<8x128xf32>
    %306 = math.tanh %305 : vector<8x128xf32>
    %cst_160 = arith.constant 1.000000e+00 : f32
    %307 = vector.broadcast %cst_160 : f32 to vector<8x128xf32>
    %308 = arith.addf %306, %307 : vector<8x128xf32>
    %cst_161 = arith.constant 5.000000e-01 : f32
    %309 = vector.broadcast %cst_161 : f32 to vector<8x128xf32>
    %310 = arith.mulf %309, %308 : vector<8x128xf32>
    %311 = vector.extract_strided_slice %294 {offsets = [0, 256], sizes = [8, 128], strides = [1, 1]} : vector<8x512xf32> to vector<8x128xf32>
    %312 = math.tanh %311 : vector<8x128xf32>
    %313 = vector.extract_strided_slice %294 {offsets = [0, 384], sizes = [8, 128], strides = [1, 1]} : vector<8x512xf32> to vector<8x128xf32>
    %cst_162 = arith.constant 5.000000e-01 : f32
    %314 = vector.broadcast %cst_162 : f32 to vector<8x128xf32>
    %315 = arith.mulf %314, %313 : vector<8x128xf32>
    %316 = math.tanh %315 : vector<8x128xf32>
    %cst_163 = arith.constant 1.000000e+00 : f32
    %317 = vector.broadcast %cst_163 : f32 to vector<8x128xf32>
    %318 = arith.addf %316, %317 : vector<8x128xf32>
    %cst_164 = arith.constant 5.000000e-01 : f32
    %319 = vector.broadcast %cst_164 : f32 to vector<8x128xf32>
    %320 = arith.mulf %319, %318 : vector<8x128xf32>
    %321 = arith.mulf %310, %281 : vector<8x128xf32>
    %322 = arith.mulf %302, %312 : vector<8x128xf32>
    %323 = arith.addf %321, %322 : vector<8x128xf32>
    %324 = math.tanh %323 : vector<8x128xf32>
    %325 = arith.mulf %320, %324 : vector<8x128xf32>
    %326 = arith.index_cast %c5_i32 : i32 to index
    %c0_165 = arith.constant 0 : index
    %c0_166 = arith.constant 0 : index
    %327 = vector.load %arg8[%326, %c0_165, %c0_166] : memref<8x8x128xf32, #tpu.memory_space<vmem>>, vector<1x8x128xf32>
    %328 = vector.shape_cast %327 : vector<1x8x128xf32> to vector<8x128xf32>
    %329 = vector.shape_cast %325 : vector<8x128xf32> to vector<1x8x128xf32>
    tpu.vector_store %arg8[%326, %c0_165, %c0_166], %329 {strides = array<i32>} : memref<8x8x128xf32, #tpu.memory_space<vmem>>, vector<1x8x128xf32>,
    %c6_i32 = arith.constant 6 : i32
    %330 = arith.index_cast %c6_i32 : i32 to index
    %c0_167 = arith.constant 0 : index
    %c0_168 = arith.constant 0 : index
    %331 = vector.load %arg10[%330, %c0_167, %c0_168] : memref<8x8x512xf32, #tpu.memory_space<vmem>>, vector<1x8x512xf32>
    %332 = vector.shape_cast %331 : vector<1x8x512xf32> to vector<8x512xf32>
    %333 = arith.truncf %325 : vector<8x128xf32> to vector<8x128xbf16>
    %c0_169 = arith.constant 0 : index
    %c0_170 = arith.constant 0 : index
    %334 = vector.load %arg4[%c0_169, %c0_170] : memref<128x512xbf16, #tpu.memory_space<vmem>>, vector<128x512xbf16>
    %cst_171 = arith.constant dense<0.000000e+00> : vector<8x512xf32>
    %335 = tpu.matmul %333, %334, %cst_171 {dimension_numbers = #tpu.dot_dimension_numbers<[1], [0], [0], [1], [0, 0, 1, 1], [], []>} : vector<8x128xbf16>, vector<128x512xbf16>, vector<8x512xf32> -> vector<8x512xf32>
    %336 = arith.addf %332, %335 : vector<8x512xf32>
    %337 = vector.extract_strided_slice %336 {offsets = [0, 0], sizes = [8, 128], strides = [1, 1]} : vector<8x512xf32> to vector<8x128xf32>
    %cst_172 = arith.constant 5.000000e-01 : f32
    %338 = vector.broadcast %cst_172 : f32 to vector<8x128xf32>
    %339 = arith.mulf %338, %337 : vector<8x128xf32>
    %340 = math.tanh %339 : vector<8x128xf32>
    %cst_173 = arith.constant 1.000000e+00 : f32
    %341 = vector.broadcast %cst_173 : f32 to vector<8x128xf32>
    %342 = arith.addf %340, %341 : vector<8x128xf32>
    %cst_174 = arith.constant 5.000000e-01 : f32
    %343 = vector.broadcast %cst_174 : f32 to vector<8x128xf32>
    %344 = arith.mulf %343, %342 : vector<8x128xf32>
    %345 = vector.extract_strided_slice %336 {offsets = [0, 128], sizes = [8, 128], strides = [1, 1]} : vector<8x512xf32> to vector<8x128xf32>
    %cst_175 = arith.constant 5.000000e-01 : f32
    %346 = vector.broadcast %cst_175 : f32 to vector<8x128xf32>
    %347 = arith.mulf %346, %345 : vector<8x128xf32>
    %348 = math.tanh %347 : vector<8x128xf32>
    %cst_176 = arith.constant 1.000000e+00 : f32
    %349 = vector.broadcast %cst_176 : f32 to vector<8x128xf32>
    %350 = arith.addf %348, %349 : vector<8x128xf32>
    %cst_177 = arith.constant 5.000000e-01 : f32
    %351 = vector.broadcast %cst_177 : f32 to vector<8x128xf32>
    %352 = arith.mulf %351, %350 : vector<8x128xf32>
    %353 = vector.extract_strided_slice %336 {offsets = [0, 256], sizes = [8, 128], strides = [1, 1]} : vector<8x512xf32> to vector<8x128xf32>
    %354 = math.tanh %353 : vector<8x128xf32>
    %355 = vector.extract_strided_slice %336 {offsets = [0, 384], sizes = [8, 128], strides = [1, 1]} : vector<8x512xf32> to vector<8x128xf32>
    %cst_178 = arith.constant 5.000000e-01 : f32
    %356 = vector.broadcast %cst_178 : f32 to vector<8x128xf32>
    %357 = arith.mulf %356, %355 : vector<8x128xf32>
    %358 = math.tanh %357 : vector<8x128xf32>
    %cst_179 = arith.constant 1.000000e+00 : f32
    %359 = vector.broadcast %cst_179 : f32 to vector<8x128xf32>
    %360 = arith.addf %358, %359 : vector<8x128xf32>
    %cst_180 = arith.constant 5.000000e-01 : f32
    %361 = vector.broadcast %cst_180 : f32 to vector<8x128xf32>
    %362 = arith.mulf %361, %360 : vector<8x128xf32>
    %363 = arith.mulf %352, %323 : vector<8x128xf32>
    %364 = arith.mulf %344, %354 : vector<8x128xf32>
    %365 = arith.addf %363, %364 : vector<8x128xf32>
    %366 = math.tanh %365 : vector<8x128xf32>
    %367 = arith.mulf %362, %366 : vector<8x128xf32>
    %368 = arith.index_cast %c6_i32 : i32 to index
    %c0_181 = arith.constant 0 : index
    %c0_182 = arith.constant 0 : index
    %369 = vector.load %arg8[%368, %c0_181, %c0_182] : memref<8x8x128xf32, #tpu.memory_space<vmem>>, vector<1x8x128xf32>
    %370 = vector.shape_cast %369 : vector<1x8x128xf32> to vector<8x128xf32>
    %371 = vector.shape_cast %367 : vector<8x128xf32> to vector<1x8x128xf32>
    tpu.vector_store %arg8[%368, %c0_181, %c0_182], %371 {strides = array<i32>} : memref<8x8x128xf32, #tpu.memory_space<vmem>>, vector<1x8x128xf32>,
    %c7_i32 = arith.constant 7 : i32
    %372 = arith.index_cast %c7_i32 : i32 to index
    %c0_183 = arith.constant 0 : index
    %c0_184 = arith.constant 0 : index
    %373 = vector.load %arg10[%372, %c0_183, %c0_184] : memref<8x8x512xf32, #tpu.memory_space<vmem>>, vector<1x8x512xf32>
    %374 = vector.shape_cast %373 : vector<1x8x512xf32> to vector<8x512xf32>
    %375 = arith.truncf %367 : vector<8x128xf32> to vector<8x128xbf16>
    %c0_185 = arith.constant 0 : index
    %c0_186 = arith.constant 0 : index
    %376 = vector.load %arg4[%c0_185, %c0_186] : memref<128x512xbf16, #tpu.memory_space<vmem>>, vector<128x512xbf16>
    %cst_187 = arith.constant dense<0.000000e+00> : vector<8x512xf32>
    %377 = tpu.matmul %375, %376, %cst_187 {dimension_numbers = #tpu.dot_dimension_numbers<[1], [0], [0], [1], [0, 0, 1, 1], [], []>} : vector<8x128xbf16>, vector<128x512xbf16>, vector<8x512xf32> -> vector<8x512xf32>
    %378 = arith.addf %374, %377 : vector<8x512xf32>
    %379 = vector.extract_strided_slice %378 {offsets = [0, 0], sizes = [8, 128], strides = [1, 1]} : vector<8x512xf32> to vector<8x128xf32>
    %cst_188 = arith.constant 5.000000e-01 : f32
    %380 = vector.broadcast %cst_188 : f32 to vector<8x128xf32>
    %381 = arith.mulf %380, %379 : vector<8x128xf32>
    %382 = math.tanh %381 : vector<8x128xf32>
    %cst_189 = arith.constant 1.000000e+00 : f32
    %383 = vector.broadcast %cst_189 : f32 to vector<8x128xf32>
    %384 = arith.addf %382, %383 : vector<8x128xf32>
    %cst_190 = arith.constant 5.000000e-01 : f32
    %385 = vector.broadcast %cst_190 : f32 to vector<8x128xf32>
    %386 = arith.mulf %385, %384 : vector<8x128xf32>
    %387 = vector.extract_strided_slice %378 {offsets = [0, 128], sizes = [8, 128], strides = [1, 1]} : vector<8x512xf32> to vector<8x128xf32>
    %cst_191 = arith.constant 5.000000e-01 : f32
    %388 = vector.broadcast %cst_191 : f32 to vector<8x128xf32>
    %389 = arith.mulf %388, %387 : vector<8x128xf32>
    %390 = math.tanh %389 : vector<8x128xf32>
    %cst_192 = arith.constant 1.000000e+00 : f32
    %391 = vector.broadcast %cst_192 : f32 to vector<8x128xf32>
    %392 = arith.addf %390, %391 : vector<8x128xf32>
    %cst_193 = arith.constant 5.000000e-01 : f32
    %393 = vector.broadcast %cst_193 : f32 to vector<8x128xf32>
    %394 = arith.mulf %393, %392 : vector<8x128xf32>
    %395 = vector.extract_strided_slice %378 {offsets = [0, 256], sizes = [8, 128], strides = [1, 1]} : vector<8x512xf32> to vector<8x128xf32>
    %396 = math.tanh %395 : vector<8x128xf32>
    %397 = vector.extract_strided_slice %378 {offsets = [0, 384], sizes = [8, 128], strides = [1, 1]} : vector<8x512xf32> to vector<8x128xf32>
    %cst_194 = arith.constant 5.000000e-01 : f32
    %398 = vector.broadcast %cst_194 : f32 to vector<8x128xf32>
    %399 = arith.mulf %398, %397 : vector<8x128xf32>
    %400 = math.tanh %399 : vector<8x128xf32>
    %cst_195 = arith.constant 1.000000e+00 : f32
    %401 = vector.broadcast %cst_195 : f32 to vector<8x128xf32>
    %402 = arith.addf %400, %401 : vector<8x128xf32>
    %cst_196 = arith.constant 5.000000e-01 : f32
    %403 = vector.broadcast %cst_196 : f32 to vector<8x128xf32>
    %404 = arith.mulf %403, %402 : vector<8x128xf32>
    %405 = arith.mulf %394, %365 : vector<8x128xf32>
    %406 = arith.mulf %386, %396 : vector<8x128xf32>
    %407 = arith.addf %405, %406 : vector<8x128xf32>
    %408 = math.tanh %407 : vector<8x128xf32>
    %409 = arith.mulf %404, %408 : vector<8x128xf32>
    %410 = arith.index_cast %c7_i32 : i32 to index
    %c0_197 = arith.constant 0 : index
    %c0_198 = arith.constant 0 : index
    %411 = vector.load %arg8[%410, %c0_197, %c0_198] : memref<8x8x128xf32, #tpu.memory_space<vmem>>, vector<1x8x128xf32>
    %412 = vector.shape_cast %411 : vector<1x8x128xf32> to vector<8x128xf32>
    %413 = vector.shape_cast %409 : vector<8x128xf32> to vector<1x8x128xf32>
    tpu.vector_store %arg8[%410, %c0_197, %c0_198], %413 {strides = array<i32>} : memref<8x8x128xf32, #tpu.memory_space<vmem>>, vector<1x8x128xf32>,
    %c8_i32 = arith.constant 8 : i32
    %c0_199 = arith.constant 0 : index
    %c0_200 = arith.constant 0 : index
    %414 = vector.load %arg11[%c0_199, %c0_200] : memref<8x128xf32, #tpu.memory_space<vmem>>, vector<8x128xf32>
    tpu.vector_store %arg11[%c0_199, %c0_200], %409 {strides = array<i32>} : memref<8x128xf32, #tpu.memory_space<vmem>>, vector<8x128xf32>,
    %c0_201 = arith.constant 0 : index
    %c0_202 = arith.constant 0 : index
    %415 = vector.load %arg12[%c0_201, %c0_202] : memref<8x128xf32, #tpu.memory_space<vmem>>, vector<8x128xf32>
    tpu.vector_store %arg12[%c0_201, %c0_202], %407 {strides = array<i32>} : memref<8x128xf32, #tpu.memory_space<vmem>>, vector<8x128xf32>,
    %c0_i32_203 = arith.constant 0 : i32
    %416 = arith.cmpi eq, %arg1, %c0_i32_203 : i32
    %417 = arith.extui %416 : i1 to i32
    %c0_i32_204 = arith.constant 0 : i32
    %418 = arith.cmpi ne, %417, %c0_i32_204 : i32
    scf.if %418 {
      %c0_205 = arith.constant 0 : index
      %c0_206 = arith.constant 0 : index
      %c0_207 = arith.constant 0 : index
      %419 = vector.load %arg9[%c0_205, %c0_206, %c0_207] : memref<1x8x128xf32, #tpu.memory_space<vmem>>, vector<1x8x128xf32>
      %420 = vector.shape_cast %419 : vector<1x8x128xf32> to vector<8x128xf32>
      %421 = vector.shape_cast %407 : vector<8x128xf32> to vector<1x8x128xf32>
      tpu.vector_store %arg9[%c0_205, %c0_206, %c0_207], %421 {strides = array<i32>} : memref<1x8x128xf32, #tpu.memory_space<vmem>>, vector<1x8x128xf32>,
    } else {
    }
    return
  }
  func.func @transform_0(%arg0: i32, %arg1: i32) -> (i32, i32, i32) {
    %c0_i32 = arith.constant 0 : i32
    %c0_i32_0 = arith.constant 0 : i32
    return %arg1, %arg0, %c0_i32 : i32, i32, i32
  }
  func.func @transform_1(%arg0: i32, %arg1: i32) -> (i32, i32) {
    %c0_i32 = arith.constant 0 : i32
    %c0_i32_0 = arith.constant 0 : i32
    %c0_i32_1 = arith.constant 0 : i32
    return %c0_i32, %c0_i32_0 : i32, i32
  }
  func.func @transform_2(%arg0: i32, %arg1: i32) -> (i32, i32) {
    %c0_i32 = arith.constant 0 : i32
    %c0_i32_0 = arith.constant 0 : i32
    %c0_i32_1 = arith.constant 0 : i32
    return %c0_i32, %c0_i32_0 : i32, i32
  }
  func.func @transform_3(%arg0: i32, %arg1: i32) -> (i32, i32) {
    %c0_i32 = arith.constant 0 : i32
    %c0_i32_0 = arith.constant 0 : i32
    %c0_i32_1 = arith.constant 0 : i32
    return %c0_i32, %c0_i32_0 : i32, i32
  }
  func.func @transform_4(%arg0: i32, %arg1: i32) -> (i32, i32, i32) {
    %c0_i32 = arith.constant 0 : i32
    %c0_i32_0 = arith.constant 0 : i32
    %c0_i32_1 = arith.constant 0 : i32
    return %c0_i32, %arg0, %c0_i32_0 : i32, i32, i32
  }
  func.func @transform_5(%arg0: i32, %arg1: i32) -> (i32, i32, i32) {
    %c0_i32 = arith.constant 0 : i32
    %c0_i32_0 = arith.constant 0 : i32
    %c0_i32_1 = arith.constant 0 : i32
    return %c0_i32, %arg0, %c0_i32_0 : i32, i32, i32
  }
  func.func @transform_6(%arg0: i32, %arg1: i32) -> (i32, i32, i32) {
    %c0_i32 = arith.constant 0 : i32
    %c0_i32_0 = arith.constant 0 : i32
    return %arg1, %arg0, %c0_i32 : i32, i32, i32
  }
  func.func @transform_7(%arg0: i32, %arg1: i32) -> (i32, i32, i32) {
    %c0_i32 = arith.constant 0 : i32
    %c0_i32_0 = arith.constant 0 : i32
    %c0_i32_1 = arith.constant 0 : i32
    return %c0_i32, %arg0, %c0_i32_0 : i32, i32, i32
  }
}

</mosaic_0001>

<bundles_post_ra>
// kernel: lstm_forward.1
= control target key start
LH: loop header
LB: loop body
LE: loop exit
PB: predicated region body
PF: predicated region fallthrough
CT: control target
= control target key end

     0   :  { %v6929_v1 = vmov 0   ;;  %s6921_s1 = inlined_call_operand.vmem [shape: bf16[128,512], index: 1, kind: input, shape index: {}]   ;;  %s6922_s0 = inlined_call_operand.vmem [shape: bf16[8,8,128], index: 0, kind: input, shape index: {}]   ;;  %s6923_s2 = inlined_call_operand.vmem [shape: bf16[128,512], index: 2, kind: input, shape index: {}]   ;;  %s6924_s4 = inlined_call_operand.vmem [shape: f32[1,8,128], index: 4, kind: input, shape index: {}, may-alias: {4,5}]   ;;  %s6925_s3 = inlined_call_operand.vmem [shape: f32[1,512], index: 3, kind: input, shape index: {}]   ;;  %s6926_s5 = inlined_call_operand.vmem [shape: f32[1,8,128], index: 5, kind: input, shape index: {}, may-alias: {4,5}]   ;;  %s6927_s6 = inlined_call_operand.vmem [shape: f32[8,8,128], index: 6, kind: output, shape index: {0}]   ;;  %s6928_s7 = inlined_call_operand.vmem [shape: f32[1,8,128], index: 7, kind: output, shape index: {1}]  }
   0x1   :  { %v5584_v0 = vld [vmem:[%s6921_s1 + $0xe4] ss:$16 sps:$4 sm:$0xff]   ;;  %281 = vmatprep.mubr.bf16.mxu0 %v6929_v1  ;;  %322 = vmatprep.mubr.bf16.mxu1 %v6929_v1  ;;  %v5591_v2 = vld [vmem:[%s6921_s1 + $0xec] ss:$16 sps:$4 sm:$0xff]   ;;  %v5597_v3 = vld [vmem:[%s6921_s1 + $0xe0] ss:$16 sps:$4 sm:$0xff]  }
   0x2   :  { %249 = vmatprep.subr.bf16.mxu0 %v5584_v0  ;;  %v5602_v4 = vld [vmem:[%s6921_s1 + $0xe8] ss:$16 sps:$4 sm:$0xff]   ;;  %290 = vmatprep.subr.bf16.mxu1 %v5591_v2  ;;  %v5608_v5 = vld [vmem:[%s6921_s1 + $0xc4] ss:$16 sps:$4 sm:$0xff]   ;;  %v5615_v6 = vld [vmem:[%s6921_s1 + $0xcc] ss:$16 sps:$4 sm:$0xff]  }
   0x3   :  { %250 = vmatpush1.bf16.msra.mxu0 %v5597_v3  ;;  %291 = vmatpush1.bf16.msra.mxu1 %v5602_v4  ;;  %v5620_v7 = vld [vmem:[%s6921_s1 + $0xc0] ss:$16 sps:$4 sm:$0xff]   ;;  %v5626_v8 = vld [vmem:[%s6921_s1 + $0xc8] ss:$16 sps:$4 sm:$0xff]   ;;  %v5632_v9 = vld [vmem:[%s6921_s1 + $0xa4] ss:$16 sps:$4 sm:$0xff]  }
   0x4   :  { %251 = vmatprep.subr.bf16.mxu0 %v5608_v5  ;;  %292 = vmatprep.subr.bf16.mxu1 %v5615_v6  ;;  %v5637_v10 = vld [vmem:[%s6921_s1 + $0xac] ss:$16 sps:$4 sm:$0xff]   ;;  %v5642_v11 = vld [vmem:[%s6921_s1 + $0xa0] ss:$16 sps:$4 sm:$0xff]   ;;  %v5647_v12 = vld [vmem:[%s6921_s1 + $0xa8] ss:$16 sps:$4 sm:$0xff]  }
   0x5   :  { %v5654_v13 = vld [vmem:[%s6921_s1 + $0x84] ss:$16 sps:$4 sm:$0xff]   ;;  %v5661_v14 = vld [vmem:[%s6921_s1 + $0x8c] ss:$16 sps:$4 sm:$0xff]   ;;  %v5666_v15 = vld [vmem:[%s6921_s1 + $0x80] ss:$16 sps:$4 sm:$0xff]  }
   0x6   :  { %v5673_v16 = vld [vmem:[%s6921_s1 + $0x88] ss:$16 sps:$4 sm:$0xff]   ;;  %v5678_v17 = vld [vmem:[%s6921_s1 + $0x64] ss:$16 sps:$4 sm:$0xff]   ;;  %v5685_v18 = vld [vmem:[%s6921_s1 + $0x6c] ss:$16 sps:$4 sm:$0xff]  }
   0x7   :  { %252 = vmatpush1.bf16.msra.mxu0 %v5620_v7  ;;  %293 = vmatpush1.bf16.msra.mxu1 %v5626_v8  ;;  %v5690_v19 = vld [vmem:[%s6921_s1 + $0x60] ss:$16 sps:$4 sm:$0xff]   ;;  %v5695_v20 = vld [vmem:[%s6921_s1 + $0x68] ss:$16 sps:$4 sm:$0xff]   ;;  %v5702_v21 = vld [vmem:[%s6921_s1 + $0x44] ss:$16 sps:$4 sm:$0xff]  }
   0x8   :  { %253 = vmatprep.subr.bf16.mxu0 %v5632_v9  ;;  %294 = vmatprep.subr.bf16.mxu1 %v5637_v10  ;;  %v5709_v22 = vld [vmem:[%s6921_s1 + $0x4c] ss:$16 sps:$4 sm:$0xff]   ;;  %v5716_v23 = vld [vmem:[%s6921_s1 + $0x40] ss:$16 sps:$4 sm:$0xff]   ;;  %v5721_v24 = vld [vmem:[%s6921_s1 + $0x48] ss:$16 sps:$4 sm:$0xff]  }
   0x9   :  { %v5728_v25 = vld [vmem:[%s6921_s1 + $0x24] ss:$16 sps:$4 sm:$0xff]   ;;  %v5733_v26 = vld [vmem:[%s6921_s1 + $0x2c] ss:$16 sps:$4 sm:$0xff]   ;;  %v5738_v27 = vld [vmem:[%s6921_s1 + $0x20] ss:$16 sps:$4 sm:$0xff]  }
   0xa   :  { %v5743_v28 = vld [vmem:[%s6921_s1 + $0x28] ss:$16 sps:$4 sm:$0xff]   ;;  %v5748_v29 = vld [vmem:[%s6921_s1 + $0x4] ss:$16 sps:$4 sm:$0xff]   ;;  %v5753_v30 = vld [vmem:[%s6921_s1 + $0xc] ss:$16 sps:$4 sm:$0xff]  }
   0xb   :  { %254 = vmatpush1.bf16.msra.mxu0 %v5642_v11  ;;  %295 = vmatpush1.bf16.msra.mxu1 %v5647_v12  ;;  %v5762_v31 = vld [vmem:[%s6921_s1] ss:$16 sps:$4 sm:$0xff]   ;;  %v5767_v32 = vld [vmem:[%s6921_s1 + $0x8] ss:$16 sps:$4 sm:$0xff]   ;;  %v4773_v34 = vld [vmem:[%s6922_s0 + $0x4] sm:$0xf] }
   0xc   :  { %255 = vmatprep.subr.bf16.mxu0 %v5654_v13  ;;  %296 = vmatprep.subr.bf16.mxu1 %v5661_v14  ;;  %v35_v33 = vld [vmem:[%s6922_s0] sm:$0xf]  ;;  %v4806_v35 = vld [vmem:[%s6922_s0 + $0x8] sm:$0xf]  ;;  %v4839_v36 = vld [vmem:[%s6922_s0 + $0xc] sm:$0xf] }
   0xd   :  { %v4872_v37 = vld [vmem:[%s6922_s0 + $0x10] sm:$0xf]  ;;  %v5961_v38 = vld [vmem:[%s6921_s1 + $0xe4] ss:$16 sps:$4 sm:$0xff]   ;;  %v5966_v39 = vld [vmem:[%s6921_s1 + $0xec] ss:$16 sps:$4 sm:$0xff]  }
   0xe   :  { %v4905_v40 = vld [vmem:[%s6922_s0 + $0x14] sm:$0xf]  ;;  %v5976_v41 = vld [vmem:[%s6921_s1 + $0xe0] ss:$16 sps:$4 sm:$0xff]   ;;  %v5981_v42 = vld [vmem:[%s6921_s1 + $0xe8] ss:$16 sps:$4 sm:$0xff]  }
   0xf   :  { %256 = vmatpush1.bf16.msra.mxu0 %v5666_v15  ;;  %297 = vmatpush1.bf16.msra.mxu1 %v5673_v16  ;;  %v5988_v43 = vld [vmem:[%s6921_s1 + $0xc4] ss:$16 sps:$4 sm:$0xff]   ;;  %v5993_v44 = vld [vmem:[%s6921_s1 + $0xcc] ss:$16 sps:$4 sm:$0xff]   ;;  %v6000_v45 = vld [vmem:[%s6921_s1 + $0xc0] ss:$16 sps:$4 sm:$0xff]  }
  0x10   :  { %257 = vmatprep.subr.bf16.mxu0 %v5678_v17  ;;  %298 = vmatprep.subr.bf16.mxu1 %v5685_v18  ;;  %v6005_v46 = vld [vmem:[%s6921_s1 + $0xc8] ss:$16 sps:$4 sm:$0xff]   ;;  %v6012_v47 = vld [vmem:[%s6921_s1 + $0xa4] ss:$16 sps:$4 sm:$0xff]   ;;  %v6017_v48 = vld [vmem:[%s6921_s1 + $0xac] ss:$16 sps:$4 sm:$0xff]  }
  0x11   :  { %v6026_v49 = vld [vmem:[%s6921_s1 + $0xa0] ss:$16 sps:$4 sm:$0xff]   ;;  %v6031_v50 = vld [vmem:[%s6921_s1 + $0xa8] ss:$16 sps:$4 sm:$0xff]   ;;  %v6038_v51 = vld [vmem:[%s6921_s1 + $0x84] ss:$16 sps:$4 sm:$0xff]  }
  0x12   :  { %v6043_v52 = vld [vmem:[%s6921_s1 + $0x8c] ss:$16 sps:$4 sm:$0xff]   ;;  %v6050_v53 = vld [vmem:[%s6921_s1 + $0x80] ss:$16 sps:$4 sm:$0xff]   ;;  %v6055_v54 = vld [vmem:[%s6921_s1 + $0x88] ss:$16 sps:$4 sm:$0xff]  }
  0x13   :  { %258 = vmatpush1.bf16.msra.mxu0 %v5690_v19  ;;  %299 = vmatpush1.bf16.msra.mxu1 %v5695_v20  ;;  %v5342_v55 = vld [vmem:[%s6921_s1 + $0x64] ss:$16 sps:$4 sm:$0xff]   ;;  %v5345_v56 = vld [vmem:[%s6921_s1 + $0x6c] ss:$16 sps:$4 sm:$0xff]   ;;  %v5340_v57 = vld [vmem:[%s6921_s1 + $0x60] ss:$16 sps:$4 sm:$0xff]  }
  0x14   :  { %259 = vmatprep.subr.bf16.mxu0 %v5702_v21  ;;  %300 = vmatprep.subr.bf16.mxu1 %v5709_v22  ;;  %v5343_v58 = vld [vmem:[%s6921_s1 + $0x68] ss:$16 sps:$4 sm:$0xff]   ;;  %v5348_v59 = vld [vmem:[%s6921_s1 + $0x44] ss:$16 sps:$4 sm:$0xff]   ;;  %v5351_v60 = vld [vmem:[%s6921_s1 + $0x4c] ss:$16 sps:$4 sm:$0xff]  }
  0x15   :  { %v5346_v61 = vld [vmem:[%s6921_s1 + $0x40] ss:$16 sps:$4 sm:$0xff]   ;;  %v5349_v62 = vld [vmem:[%s6921_s1 + $0x48] ss:$16 sps:$4 sm:$0xff]   ;;  %v5354_v63 = vld [vmem:[%s6921_s1 + $0x24] ss:$16 sps:$4 sm:$0xff]  }
  0x17   :  { %260 = vmatpush1.bf16.msra.mxu0 %v5716_v23  ;;  %301 = vmatpush1.bf16.msra.mxu1 %v5721_v24 }
  0x18   :  { %261 = vmatprep.subr.bf16.mxu0 %v5728_v25  ;;  %302 = vmatprep.subr.bf16.mxu1 %v5733_v26 }
  0x1b   :  { %262 = vmatpush1.bf16.msra.mxu0 %v5738_v27  ;;  %303 = vmatpush1.bf16.msra.mxu1 %v5743_v28 }
  0x1c   :  { %263 = vmatprep.subr.bf16.mxu0 %v5748_v29  ;;  %304 = vmatprep.subr.bf16.mxu1 %v5753_v30 }
  0x1f   :  { %264 = vmatpush1.bf16.msra.mxu0 %v5762_v31  ;;  %305 = vmatpush1.bf16.msra.mxu1 %v5767_v32 }
  0x20   :  { %529 = vmatprep.subr.bf16.mxu0 %v5584_v0  ;;  %570 = vmatprep.subr.bf16.mxu1 %v5591_v2 }
  0x22   :  { %282 = vmatmul.mubr.bf16.vlgmr.msra.gmra.mxu0 %v35_v33  ;;  %323 = vmatmul.mubr.bf16.vlgmr.msra.gmra.mxu1 %v35_v33 }
  0x23   :  { %530 = vmatpush1.bf16.msra.mxu0 %v5597_v3  ;;  %571 = vmatpush1.bf16.msra.mxu1 %v5602_v4 }
  0x24   :  { %531 = vmatprep.subr.bf16.mxu0 %v5608_v5  ;;  %572 = vmatprep.subr.bf16.mxu1 %v5615_v6 }
  0x25   :  { %561 = vmatprep.mubr.bf16.mxu0 %v6929_v1  ;;  %602 = vmatprep.mubr.bf16.mxu1 %v6929_v1 }
  0x27   :  { %532 = vmatpush1.bf16.msra.mxu0 %v5620_v7  ;;  %573 = vmatpush1.bf16.msra.mxu1 %v5626_v8 }
  0x28   :  { %533 = vmatprep.subr.bf16.mxu0 %v5632_v9  ;;  %574 = vmatprep.subr.bf16.mxu1 %v5637_v10 }
  0x2b   :  { %534 = vmatpush1.bf16.msra.mxu0 %v5642_v11  ;;  %575 = vmatpush1.bf16.msra.mxu1 %v5647_v12 }
  0x2c   :  { %535 = vmatprep.subr.bf16.mxu0 %v5654_v13  ;;  %576 = vmatprep.subr.bf16.mxu1 %v5661_v14 }
  0x2f   :  { %536 = vmatpush1.bf16.msra.mxu0 %v5666_v15  ;;  %577 = vmatpush1.bf16.msra.mxu1 %v5673_v16 }
  0x30   :  { %537 = vmatprep.subr.bf16.mxu0 %v5678_v17  ;;  %578 = vmatprep.subr.bf16.mxu1 %v5685_v18 }
  0x33   :  { %538 = vmatpush1.bf16.msra.mxu0 %v5690_v19  ;;  %579 = vmatpush1.bf16.msra.mxu1 %v5695_v20 }
  0x34   :  { %539 = vmatprep.subr.bf16.mxu0 %v5702_v21  ;;  %580 = vmatprep.subr.bf16.mxu1 %v5709_v22 }
  0x37   :  { %540 = vmatpush1.bf16.msra.mxu0 %v5716_v23  ;;  %581 = vmatpush1.bf16.msra.mxu1 %v5721_v24 }
  0x38   :  { %541 = vmatprep.subr.bf16.mxu0 %v5728_v25  ;;  %582 = vmatprep.subr.bf16.mxu1 %v5733_v26 }
  0x3b   :  { %542 = vmatpush1.bf16.msra.mxu0 %v5738_v27  ;;  %583 = vmatpush1.bf16.msra.mxu1 %v5743_v28 }
  0x3c   :  { %543 = vmatprep.subr.bf16.mxu0 %v5748_v29  ;;  %584 = vmatprep.subr.bf16.mxu1 %v5753_v30 }
  0x3f   :  { %544 = vmatpush1.bf16.msra.mxu0 %v5762_v31  ;;  %585 = vmatpush1.bf16.msra.mxu1 %v5767_v32 }
  0x40   :  { %810 = vmatprep.subr.bf16.mxu0 %v5584_v0  ;;  %851 = vmatprep.subr.bf16.mxu1 %v5591_v2 }
  0x42   :  { %562 = vmatmul.mubr.bf16.vlgmr.msra.gmra.mxu0 %v4773_v34  ;;  %603 = vmatmul.mubr.bf16.vlgmr.msra.gmra.mxu1 %v4773_v34  ;;  %v6212_v34 = vld [vmem:[%s6923_s2 + $0xa0] ss:$16 sps:$4 sm:$0xff]  }
  0x43   :  { %811 = vmatpush1.bf16.msra.mxu0 %v5597_v3  ;;  %852 = vmatpush1.bf16.msra.mxu1 %v5602_v4 }
  0x44   :  { %812 = vmatprep.subr.bf16.mxu0 %v5608_v5  ;;  %853 = vmatprep.subr.bf16.mxu1 %v5615_v6 }
  0x45   :  { %842 = vmatprep.mubr.bf16.mxu0 %v6929_v1  ;;  %883 = vmatprep.mubr.bf16.mxu1 %v6929_v1 }
  0x47   :  { %813 = vmatpush1.bf16.msra.mxu0 %v5620_v7  ;;  %854 = vmatpush1.bf16.msra.mxu1 %v5626_v8 }
  0x48   :  { %814 = vmatprep.subr.bf16.mxu0 %v5632_v9  ;;  %855 = vmatprep.subr.bf16.mxu1 %v5637_v10 }
  0x4b   :  { %815 = vmatpush1.bf16.msra.mxu0 %v5642_v11  ;;  %856 = vmatpush1.bf16.msra.mxu1 %v5647_v12 }
  0x4c   :  { %816 = vmatprep.subr.bf16.mxu0 %v5654_v13  ;;  %857 = vmatprep.subr.bf16.mxu1 %v5661_v14 }
  0x4f   :  { %817 = vmatpush1.bf16.msra.mxu0 %v5666_v15  ;;  %858 = vmatpush1.bf16.msra.mxu1 %v5673_v16 }
  0x50   :  { %818 = vmatprep.subr.bf16.mxu0 %v5678_v17  ;;  %859 = vmatprep.subr.bf16.mxu1 %v5685_v18 }
  0x53   :  { %819 = vmatpush1.bf16.msra.mxu0 %v5690_v19  ;;  %860 = vmatpush1.bf16.msra.mxu1 %v5695_v20 }
  0x54   :  { %820 = vmatprep.subr.bf16.mxu0 %v5702_v21  ;;  %861 = vmatprep.subr.bf16.mxu1 %v5709_v22 }
  0x57   :  { %821 = vmatpush1.bf16.msra.mxu0 %v5716_v23  ;;  %862 = vmatpush1.bf16.msra.mxu1 %v5721_v24 }
  0x58   :  { %822 = vmatprep.subr.bf16.mxu0 %v5728_v25  ;;  %863 = vmatprep.subr.bf16.mxu1 %v5733_v26 }
  0x5b   :  { %823 = vmatpush1.bf16.msra.mxu0 %v5738_v27  ;;  %864 = vmatpush1.bf16.msra.mxu1 %v5743_v28 }
  0x5c   :  { %824 = vmatprep.subr.bf16.mxu0 %v5748_v29  ;;  %865 = vmatprep.subr.bf16.mxu1 %v5753_v30 }
  0x5f   :  { %825 = vmatpush1.bf16.msra.mxu0 %v5762_v31  ;;  %866 = vmatpush1.bf16.msra.mxu1 %v5767_v32 }
  0x60   :  { %1091 = vmatprep.subr.bf16.mxu0 %v5584_v0  ;;  %1132 = vmatprep.subr.bf16.mxu1 %v5591_v2 }
  0x62   :  { %843 = vmatmul.mubr.bf16.vlgmr.msra.gmra.mxu0 %v4806_v35  ;;  %884 = vmatmul.mubr.bf16.vlgmr.msra.gmra.mxu1 %v4806_v35  ;;  %v6217_v35 = vld [vmem:[%s6923_s2 + $0xa8] ss:$16 sps:$4 sm:$0xff]  }
  0x63   :  { %1092 = vmatpush1.bf16.msra.mxu0 %v5597_v3  ;;  %1133 = vmatpush1.bf16.msra.mxu1 %v5602_v4 }
  0x64   :  { %1093 = vmatprep.subr.bf16.mxu0 %v5608_v5  ;;  %1134 = vmatprep.subr.bf16.mxu1 %v5615_v6 }
  0x65   :  { %1123 = vmatprep.mubr.bf16.mxu0 %v6929_v1  ;;  %1164 = vmatprep.mubr.bf16.mxu1 %v6929_v1 }
  0x67   :  { %1094 = vmatpush1.bf16.msra.mxu0 %v5620_v7  ;;  %1135 = vmatpush1.bf16.msra.mxu1 %v5626_v8 }
  0x68   :  { %1095 = vmatprep.subr.bf16.mxu0 %v5632_v9  ;;  %1136 = vmatprep.subr.bf16.mxu1 %v5637_v10 }
  0x6b   :  { %1096 = vmatpush1.bf16.msra.mxu0 %v5642_v11  ;;  %1137 = vmatpush1.bf16.msra.mxu1 %v5647_v12 }
  0x6c   :  { %1097 = vmatprep.subr.bf16.mxu0 %v5654_v13  ;;  %1138 = vmatprep.subr.bf16.mxu1 %v5661_v14 }
  0x6f   :  { %1098 = vmatpush1.bf16.msra.mxu0 %v5666_v15  ;;  %1139 = vmatpush1.bf16.msra.mxu1 %v5673_v16 }
  0x70   :  { %1099 = vmatprep.subr.bf16.mxu0 %v5678_v17  ;;  %1140 = vmatprep.subr.bf16.mxu1 %v5685_v18 }
  0x73   :  { %1100 = vmatpush1.bf16.msra.mxu0 %v5690_v19  ;;  %1141 = vmatpush1.bf16.msra.mxu1 %v5695_v20 }
  0x74   :  { %1101 = vmatprep.subr.bf16.mxu0 %v5702_v21  ;;  %1142 = vmatprep.subr.bf16.mxu1 %v5709_v22 }
  0x77   :  { %1102 = vmatpush1.bf16.msra.mxu0 %v5716_v23  ;;  %1143 = vmatpush1.bf16.msra.mxu1 %v5721_v24 }
  0x78   :  { %1103 = vmatprep.subr.bf16.mxu0 %v5728_v25  ;;  %1144 = vmatprep.subr.bf16.mxu1 %v5733_v26 }
  0x7b   :  { %1104 = vmatpush1.bf16.msra.mxu0 %v5738_v27  ;;  %1145 = vmatpush1.bf16.msra.mxu1 %v5743_v28 }
  0x7c   :  { %1105 = vmatprep.subr.bf16.mxu0 %v5748_v29  ;;  %1146 = vmatprep.subr.bf16.mxu1 %v5753_v30 }
  0x7f   :  { %1106 = vmatpush1.bf16.msra.mxu0 %v5762_v31  ;;  %1147 = vmatpush1.bf16.msra.mxu1 %v5767_v32 }
  0x80   :  { %1372 = vmatprep.subr.bf16.mxu0 %v5584_v0  ;;  %1413 = vmatprep.subr.bf16.mxu1 %v5591_v2 }
  0x82   :  { %1124 = vmatmul.mubr.bf16.vlgmr.msra.gmra.mxu0 %v4839_v36  ;;  %1165 = vmatmul.mubr.bf16.vlgmr.msra.gmra.mxu1 %v4839_v36 }
  0x83   :  { %1373 = vmatpush1.bf16.msra.mxu0 %v5597_v3  ;;  %1414 = vmatpush1.bf16.msra.mxu1 %v5602_v4 }
  0x84   :  { %1374 = vmatprep.subr.bf16.mxu0 %v5608_v5  ;;  %1415 = vmatprep.subr.bf16.mxu1 %v5615_v6 }
  0x85   :  { %1404 = vmatprep.mubr.bf16.mxu0 %v6929_v1  ;;  %1445 = vmatprep.mubr.bf16.mxu1 %v6929_v1 }
  0x87   :  { %1375 = vmatpush1.bf16.msra.mxu0 %v5620_v7  ;;  %1416 = vmatpush1.bf16.msra.mxu1 %v5626_v8 }
  0x88   :  { %1376 = vmatprep.subr.bf16.mxu0 %v5632_v9  ;;  %1417 = vmatprep.subr.bf16.mxu1 %v5637_v10 }
  0x8b   :  { %1377 = vmatpush1.bf16.msra.mxu0 %v5642_v11  ;;  %1418 = vmatpush1.bf16.msra.mxu1 %v5647_v12 }
  0x8c   :  { %1378 = vmatprep.subr.bf16.mxu0 %v5654_v13  ;;  %1419 = vmatprep.subr.bf16.mxu1 %v5661_v14 }
  0x8f   :  { %1379 = vmatpush1.bf16.msra.mxu0 %v5666_v15  ;;  %1420 = vmatpush1.bf16.msra.mxu1 %v5673_v16 }
  0x90   :  { %1380 = vmatprep.subr.bf16.mxu0 %v5678_v17  ;;  %1421 = vmatprep.subr.bf16.mxu1 %v5685_v18 }
  0x93   :  { %1381 = vmatpush1.bf16.msra.mxu0 %v5690_v19  ;;  %1422 = vmatpush1.bf16.msra.mxu1 %v5695_v20 }
  0x94   :  { %1382 = vmatprep.subr.bf16.mxu0 %v5702_v21  ;;  %1423 = vmatprep.subr.bf16.mxu1 %v5709_v22 }
  0x97   :  { %1383 = vmatpush1.bf16.msra.mxu0 %v5716_v23  ;;  %1424 = vmatpush1.bf16.msra.mxu1 %v5721_v24 }
  0x98   :  { %1384 = vmatprep.subr.bf16.mxu0 %v5728_v25  ;;  %1425 = vmatprep.subr.bf16.mxu1 %v5733_v26 }
  0x9b   :  { %1385 = vmatpush1.bf16.msra.mxu0 %v5738_v27  ;;  %1426 = vmatpush1.bf16.msra.mxu1 %v5743_v28 }
  0x9c   :  { %1386 = vmatprep.subr.bf16.mxu0 %v5748_v29  ;;  %1427 = vmatprep.subr.bf16.mxu1 %v5753_v30 }
  0x9f   :  { %1387 = vmatpush1.bf16.msra.mxu0 %v5762_v31  ;;  %1428 = vmatpush1.bf16.msra.mxu1 %v5767_v32 }
  0xa0   :  { %1653 = vmatprep.subr.bf16.mxu0 %v5584_v0  ;;  %1694 = vmatprep.subr.bf16.mxu1 %v5591_v2  ;;  %v5357_v0 = vld [vmem:[%s6921_s1 + $0x2c] ss:$16 sps:$4 sm:$0xff]   ;;  %v5352_v2 = vld [vmem:[%s6921_s1 + $0x20] ss:$16 sps:$4 sm:$0xff]  }
  0xa2   :  { %1405 = vmatmul.mubr.bf16.vlgmr.msra.gmra.mxu0 %v4872_v37  ;;  %1446 = vmatmul.mubr.bf16.vlgmr.msra.gmra.mxu1 %v4872_v37 }
  0xa3   :  { %1654 = vmatpush1.bf16.msra.mxu0 %v5597_v3  ;;  %1695 = vmatpush1.bf16.msra.mxu1 %v5602_v4  ;;  %v5355_v3 = vld [vmem:[%s6921_s1 + $0x28] ss:$16 sps:$4 sm:$0xff]   ;;  %v5360_v4 = vld [vmem:[%s6921_s1 + $0x4] ss:$16 sps:$4 sm:$0xff]  }
  0xa4   :  { %1655 = vmatprep.subr.bf16.mxu0 %v5608_v5  ;;  %1696 = vmatprep.subr.bf16.mxu1 %v5615_v6  ;;  %v5363_v5 = vld [vmem:[%s6921_s1 + $0xc] ss:$16 sps:$4 sm:$0xff]   ;;  %v5358_v6 = vld [vmem:[%s6921_s1] ss:$16 sps:$4 sm:$0xff]  }
  0xa5   :  { %1685 = vmatprep.mubr.bf16.mxu0 %v6929_v1  ;;  %1726 = vmatprep.mubr.bf16.mxu1 %v6929_v1 }
  0xa7   :  { %1656 = vmatpush1.bf16.msra.mxu0 %v5620_v7  ;;  %1697 = vmatpush1.bf16.msra.mxu1 %v5626_v8  ;;  %v5361_v7 = vld [vmem:[%s6921_s1 + $0x8] ss:$16 sps:$4 sm:$0xff]  }
  0xa8   :  { %1657 = vmatprep.subr.bf16.mxu0 %v5632_v9  ;;  %1698 = vmatprep.subr.bf16.mxu1 %v5637_v10  ;;  %v4938_v8 = vld [vmem:[%s6922_s0 + $0x18] sm:$0xf] }
  0xab   :  { %1658 = vmatpush1.bf16.msra.mxu0 %v5642_v11  ;;  %1699 = vmatpush1.bf16.msra.mxu1 %v5647_v12 }
  0xac   :  { %1659 = vmatprep.subr.bf16.mxu0 %v5654_v13  ;;  %1700 = vmatprep.subr.bf16.mxu1 %v5661_v14 }
  0xaf   :  { %1660 = vmatpush1.bf16.msra.mxu0 %v5666_v15  ;;  %1701 = vmatpush1.bf16.msra.mxu1 %v5673_v16 }
  0xb0   :  { %1661 = vmatprep.subr.bf16.mxu0 %v5678_v17  ;;  %1702 = vmatprep.subr.bf16.mxu1 %v5685_v18  ;;  %v6141_v17 = vld [vmem:[%s6923_s2 + $0xe4] ss:$16 sps:$4 sm:$0xff]   ;;  %v6146_v18 = vld [vmem:[%s6923_s2 + $0xec] ss:$16 sps:$4 sm:$0xff]  }
  0xb3   :  { %1662 = vmatpush1.bf16.msra.mxu0 %v5690_v19  ;;  %1703 = vmatpush1.bf16.msra.mxu1 %v5695_v20  ;;  %v4971_v19 = vld [vmem:[%s6922_s0 + $0x1c] sm:$0xf]  ;;  %v6154_v20 = vld [vmem:[%s6923_s2 + $0xe0] ss:$16 sps:$4 sm:$0xff]  }
  0xb4   :  { %1663 = vmatprep.subr.bf16.mxu0 %v5702_v21  ;;  %1704 = vmatprep.subr.bf16.mxu1 %v5709_v22  ;;  %v6159_v21 = vld [vmem:[%s6923_s2 + $0xe8] ss:$16 sps:$4 sm:$0xff]   ;;  %v6166_v22 = vld [vmem:[%s6923_s2 + $0xc4] ss:$16 sps:$4 sm:$0xff]  }
  0xb7   :  { %1664 = vmatpush1.bf16.msra.mxu0 %v5716_v23  ;;  %1705 = vmatpush1.bf16.msra.mxu1 %v5721_v24  ;;  %v6171_v23 = vld [vmem:[%s6923_s2 + $0xcc] ss:$16 sps:$4 sm:$0xff]  }
  0xb8   :  { %1665 = vmatprep.subr.bf16.mxu0 %v5728_v25  ;;  %1706 = vmatprep.subr.bf16.mxu1 %v5733_v26  ;;  %v6182_v26 = vld [vmem:[%s6923_s2 + $0xc0] ss:$16 sps:$4 sm:$0xff]  }
  0xbb   :  { %1666 = vmatpush1.bf16.msra.mxu0 %v5738_v27  ;;  %1707 = vmatpush1.bf16.msra.mxu1 %v5743_v28  ;;  %v6187_v27 = vld [vmem:[%s6923_s2 + $0xc8] ss:$16 sps:$4 sm:$0xff]  }
  0xbc   :  { %1667 = vmatprep.subr.bf16.mxu0 %v5748_v29  ;;  %1708 = vmatprep.subr.bf16.mxu1 %v5753_v30  ;;  %v6198_v30 = vld [vmem:[%s6923_s2 + $0xa4] ss:$16 sps:$4 sm:$0xff]  }
  0xbf   :  { %1668 = vmatpush1.bf16.msra.mxu0 %v5762_v31  ;;  %1709 = vmatpush1.bf16.msra.mxu1 %v5767_v32  ;;  %v6203_v31 = vld [vmem:[%s6923_s2 + $0xac] ss:$16 sps:$4 sm:$0xff]  }
  0xc0   :  { %1934 = vmatprep.subr.bf16.mxu0 %v5961_v38  ;;  %1975 = vmatprep.subr.bf16.mxu1 %v5966_v39 }
  0xc2   :  { %1686 = vmatmul.mubr.bf16.vlgmr.msra.gmra.mxu0 %v4905_v40  ;;  %1727 = vmatmul.mubr.bf16.vlgmr.msra.gmra.mxu1 %v4905_v40  ;;  %v6236_v40 = vld [vmem:[%s6923_s2 + $0x80] ss:$16 sps:$4 sm:$0xff]  }
  0xc3   :  { %1935 = vmatpush1.bf16.msra.mxu0 %v5976_v41  ;;  %1976 = vmatpush1.bf16.msra.mxu1 %v5981_v42 }
  0xc4   :  { %1936 = vmatprep.subr.bf16.mxu0 %v5988_v43  ;;  %1977 = vmatprep.subr.bf16.mxu1 %v5993_v44 }
  0xc5   :  { %1966 = vmatprep.mubr.bf16.mxu0 %v6929_v1  ;;  %2007 = vmatprep.mubr.bf16.mxu1 %v6929_v1 }
  0xc7   :  { %1937 = vmatpush1.bf16.msra.mxu0 %v6000_v45  ;;  %1978 = vmatpush1.bf16.msra.mxu1 %v6005_v46 }
  0xc8   :  { %1938 = vmatprep.subr.bf16.mxu0 %v6012_v47  ;;  %1979 = vmatprep.subr.bf16.mxu1 %v6017_v48 }
  0xcb   :  { %1939 = vmatpush1.bf16.msra.mxu0 %v6026_v49  ;;  %1980 = vmatpush1.bf16.msra.mxu1 %v6031_v50 }
  0xcc   :  { %1940 = vmatprep.subr.bf16.mxu0 %v6038_v51  ;;  %1981 = vmatprep.subr.bf16.mxu1 %v6043_v52 }
  0xcf   :  { %1941 = vmatpush1.bf16.msra.mxu0 %v6050_v53  ;;  %1982 = vmatpush1.bf16.msra.mxu1 %v6055_v54 }
  0xd0   :  { %1942 = vmatprep.subr.bf16.mxu0 %v5342_v55  ;;  %1983 = vmatprep.subr.bf16.mxu1 %v5345_v56 }
  0xd3   :  { %1943 = vmatpush1.bf16.msra.mxu0 %v5340_v57  ;;  %1984 = vmatpush1.bf16.msra.mxu1 %v5343_v58 }
  0xd4   :  { %1944 = vmatprep.subr.bf16.mxu0 %v5348_v59  ;;  %1985 = vmatprep.subr.bf16.mxu1 %v5351_v60 }
  0xd7   :  { %1945 = vmatpush1.bf16.msra.mxu0 %v5346_v61  ;;  %1986 = vmatpush1.bf16.msra.mxu1 %v5349_v62 }
  0xd8   :  { %1946 = vmatprep.subr.bf16.mxu0 %v5354_v63  ;;  %1987 = vmatprep.subr.bf16.mxu1 %v5357_v0 }
  0xdb   :  { %1947 = vmatpush1.bf16.msra.mxu0 %v5352_v2  ;;  %1988 = vmatpush1.bf16.msra.mxu1 %v5355_v3 }
  0xdc   :  { %1948 = vmatprep.subr.bf16.mxu0 %v5360_v4  ;;  %1989 = vmatprep.subr.bf16.mxu1 %v5363_v5 }
  0xdf   :  { %1949 = vmatpush1.bf16.msra.mxu0 %v5358_v6  ;;  %1990 = vmatpush1.bf16.msra.mxu1 %v5361_v7 }
  0xe0   :  { %2215 = vmatprep.subr.bf16.mxu0 %v5961_v38  ;;  %2256 = vmatprep.subr.bf16.mxu1 %v5966_v39  ;;  %v6224_v38 = vld [vmem:[%s6923_s2 + $0x84] ss:$16 sps:$4 sm:$0xff]   ;;  %v6229_v39 = vld [vmem:[%s6923_s2 + $0x8c] ss:$16 sps:$4 sm:$0xff]  }
  0xe2   :  { %v6114_v9 = vpop.f32.mrf.mxu0  ;;  %1967 = vmatmul.mubr.bf16.vlgmr.msra.gmra.mxu0 %v4938_v8  ;;  %2008 = vmatmul.mubr.bf16.vlgmr.msra.gmra.mxu1 %v4938_v8  ;;  %v6116_v10 = vpop.f32.mrf.mxu1 }
  0xe3   :  { %2216 = vmatpush1.bf16.msra.mxu0 %v5976_v41  ;;  %2257 = vmatpush1.bf16.msra.mxu1 %v5981_v42  ;;  %v6241_v41 = vld [vmem:[%s6923_s2 + $0x88] ss:$16 sps:$4 sm:$0xff]   ;;  %v6248_v42 = vld [vmem:[%s6923_s2 + $0x64] ss:$16 sps:$4 sm:$0xff]  }
  0xe4   :  { %v6120_v11 = vpop.f32.mrf.mxu0  ;;  %2217 = vmatprep.subr.bf16.mxu0 %v5988_v43  ;;  %2258 = vmatprep.subr.bf16.mxu1 %v5993_v44  ;;  %v6124_v12 = vpop.f32.mrf.mxu1  ;;  %v6253_v43 = vld [vmem:[%s6923_s2 + $0x6c] ss:$16 sps:$4 sm:$0xff]   ;;  %v6260_v44 = vld [vmem:[%s6923_s2 + $0x60] ss:$16 sps:$4 sm:$0xff]  }
  0xe5   :  { %2247 = vmatprep.mubr.bf16.mxu0 %v6929_v1  ;;  %2288 = vmatprep.mubr.bf16.mxu1 %v6929_v1 }
  0xe6   :  { %v287_v13 = vpop.f32.mrf.mxu0  ;;  %v328_v14 = vpop.f32.mrf.mxu1 }
  0xe7   :  { %2218 = vmatpush1.bf16.msra.mxu0 %v6000_v45  ;;  %2259 = vmatpush1.bf16.msra.mxu1 %v6005_v46  ;;  %v6265_v45 = vld [vmem:[%s6923_s2 + $0x68] ss:$16 sps:$4 sm:$0xff]   ;;  %v6272_v46 = vld [vmem:[%s6923_s2 + $0x44] ss:$16 sps:$4 sm:$0xff]  }
  0xe8   :  { %v288_v15 = vpop.f32.mrf.mxu0  ;;  %2219 = vmatprep.subr.bf16.mxu0 %v6012_v47  ;;  %2260 = vmatprep.subr.bf16.mxu1 %v6017_v48  ;;  %v329_v16 = vpop.f32.mrf.mxu1  ;;  %v6277_v47 = vld [vmem:[%s6923_s2 + $0x4c] ss:$16 sps:$4 sm:$0xff]   ;;  %v6284_v48 = vld [vmem:[%s6923_s2 + $0x40] ss:$16 sps:$4 sm:$0xff]  }
  0xeb   :  { %2220 = vmatpush1.bf16.msra.mxu0 %v6026_v49  ;;  %2261 = vmatpush1.bf16.msra.mxu1 %v6031_v50  ;;  %v6289_v49 = vld [vmem:[%s6923_s2 + $0x48] ss:$16 sps:$4 sm:$0xff]   ;;  %v6296_v50 = vld [vmem:[%s6923_s2 + $0x24] ss:$16 sps:$4 sm:$0xff]  }
  0xec   :  { %2221 = vmatprep.subr.bf16.mxu0 %v6038_v51  ;;  %2262 = vmatprep.subr.bf16.mxu1 %v6043_v52  ;;  %v6301_v51 = vld [vmem:[%s6923_s2 + $0x2c] ss:$16 sps:$4 sm:$0xff]   ;;  %v6308_v52 = vld [vmem:[%s6923_s2 + $0x20] ss:$16 sps:$4 sm:$0xff]  }
  0xef   :  { %2222 = vmatpush1.bf16.msra.mxu0 %v6050_v53  ;;  %2263 = vmatpush1.bf16.msra.mxu1 %v6055_v54  ;;  %v6313_v53 = vld [vmem:[%s6923_s2 + $0x28] ss:$16 sps:$4 sm:$0xff]   ;;  %v6320_v54 = vld [vmem:[%s6923_s2 + $0x4] ss:$16 sps:$4 sm:$0xff]  }
  0xf0   :  { %2223 = vmatprep.subr.bf16.mxu0 %v5342_v55  ;;  %2264 = vmatprep.subr.bf16.mxu1 %v5345_v56  ;;  %v6325_v55 = vld [vmem:[%s6923_s2 + $0xc] ss:$16 sps:$4 sm:$0xff]   ;;  %v6332_v56 = vld [vmem:[%s6923_s2] ss:$16 sps:$4 sm:$0xff]  }
  0xf3   :  { %2224 = vmatpush1.bf16.msra.mxu0 %v5340_v57  ;;  %2265 = vmatpush1.bf16.msra.mxu1 %v5343_v58  ;;  %v6337_v57 = vld [vmem:[%s6923_s2 + $0x8] ss:$16 sps:$4 sm:$0xff]   ;;  %v30_v58 = vld [vmem:[%s6924_s4] sm:$0xff] }
  0xf4   :  { %2225 = vmatprep.subr.bf16.mxu0 %v5348_v59  ;;  %2266 = vmatprep.subr.bf16.mxu1 %v5351_v60  ;;  %v2308_v59 = vpack.c.bf16 %v30_v58, %v30_v58 }
  0xf7   :  { %2226 = vmatpush1.bf16.msra.mxu0 %v5346_v61  ;;  %2267 = vmatpush1.bf16.msra.mxu1 %v5349_v62 }
  0xf8   :  { %2227 = vmatprep.subr.bf16.mxu0 %v5354_v63  ;;  %2268 = vmatprep.subr.bf16.mxu1 %v5357_v0 }
  0xfb   :  { %2228 = vmatpush1.bf16.msra.mxu0 %v5352_v2  ;;  %2269 = vmatpush1.bf16.msra.mxu1 %v5355_v3 }
  0xfc   :  { %2229 = vmatprep.subr.bf16.mxu0 %v5360_v4  ;;  %2270 = vmatprep.subr.bf16.mxu1 %v5363_v5 }
  0xff   :  { %2230 = vmatpush1.bf16.msra.mxu0 %v5358_v6  ;;  %2271 = vmatpush1.bf16.msra.mxu1 %v5361_v7 }
 0x100   :  { %2501 = vmatprep.subr.bf16.mxu0 %v6141_v17  ;;  %2542 = vmatprep.subr.bf16.mxu1 %v6146_v18 }
 0x102   :  { %v6173_v24 = vpop.f32.mrf.mxu0  ;;  %2248 = vmatmul.mubr.bf16.vlgmr.msra.gmra.mxu0 %v4971_v19  ;;  %2289 = vmatmul.mubr.bf16.vlgmr.msra.gmra.mxu1 %v4971_v19  ;;  %v6175_v25 = vpop.f32.mrf.mxu1 }
 0x103   :  { %2502 = vmatpush1.bf16.msra.mxu0 %v6154_v20  ;;  %2543 = vmatpush1.bf16.msra.mxu1 %v6159_v21 }
 0x104   :  { %v6189_v28 = vpop.f32.mrf.mxu0  ;;  %2503 = vmatprep.subr.bf16.mxu0 %v6166_v22  ;;  %2544 = vmatprep.subr.bf16.mxu1 %v6171_v23  ;;  %v6193_v29 = vpop.f32.mrf.mxu1 }
 0x105   :  { %2533 = vmatprep.mubr.bf16.mxu0 %v6929_v1  ;;  %2574 = vmatprep.mubr.bf16.mxu1 %v6929_v1 }
 0x106   :  { %v567_v32 = vpop.f32.mrf.mxu0  ;;  %v608_v33 = vpop.f32.mrf.mxu1 }
 0x107   :  { %2504 = vmatpush1.bf16.msra.mxu0 %v6182_v26  ;;  %2545 = vmatpush1.bf16.msra.mxu1 %v6187_v27 }
 0x108   :  { %v568_v36 = vpop.f32.mrf.mxu0  ;;  %2505 = vmatprep.subr.bf16.mxu0 %v6198_v30  ;;  %2546 = vmatprep.subr.bf16.mxu1 %v6203_v31  ;;  %v609_v37 = vpop.f32.mrf.mxu1 }
 0x10b   :  { %2506 = vmatpush1.bf16.msra.mxu0 %v6212_v34  ;;  %2547 = vmatpush1.bf16.msra.mxu1 %v6217_v35 }
 0x10c   :  { %2507 = vmatprep.subr.bf16.mxu0 %v6224_v38  ;;  %2548 = vmatprep.subr.bf16.mxu1 %v6229_v39 }
 0x10f   :  { %2508 = vmatpush1.bf16.msra.mxu0 %v6236_v40  ;;  %2549 = vmatpush1.bf16.msra.mxu1 %v6241_v41 }
 0x110   :  { %2509 = vmatprep.subr.bf16.mxu0 %v6248_v42  ;;  %2550 = vmatprep.subr.bf16.mxu1 %v6253_v43 }
 0x113   :  { %2510 = vmatpush1.bf16.msra.mxu0 %v6260_v44  ;;  %2551 = vmatpush1.bf16.msra.mxu1 %v6265_v45 }
 0x114   :  { %2511 = vmatprep.subr.bf16.mxu0 %v6272_v46  ;;  %2552 = vmatprep.subr.bf16.mxu1 %v6277_v47 }
 0x117   :  { %2512 = vmatpush1.bf16.msra.mxu0 %v6284_v48  ;;  %2553 = vmatpush1.bf16.msra.mxu1 %v6289_v49 }
 0x118   :  { %2513 = vmatprep.subr.bf16.mxu0 %v6296_v50  ;;  %2554 = vmatprep.subr.bf16.mxu1 %v6301_v51 }
 0x11b   :  { %2514 = vmatpush1.bf16.msra.mxu0 %v6308_v52  ;;  %2555 = vmatpush1.bf16.msra.mxu1 %v6313_v53 }
 0x11c   :  { %2515 = vmatprep.subr.bf16.mxu0 %v6320_v54  ;;  %2556 = vmatprep.subr.bf16.mxu1 %v6325_v55 }
 0x11f   :  { %2516 = vmatpush1.bf16.msra.mxu0 %v6332_v56  ;;  %2557 = vmatpush1.bf16.msra.mxu1 %v6337_v57 }
 0x120   :  { %2803 = vmatprep.subr.bf16.mxu0 %v6141_v17  ;;  %2844 = vmatprep.subr.bf16.mxu1 %v6146_v18 }
 0x122   :  { %v6348_v60 = vpop.f32.mrf.mxu0  ;;  %2534 = vmatmul.mubr.bf16.vlgmr.msra.gmra.mxu0 %v2308_v59  ;;  %2575 = vmatmul.mubr.bf16.vlgmr.msra.gmra.mxu1 %v2308_v59  ;;  %v6350_v61 = vpop.f32.mrf.mxu1 }
 0x123   :  { %6931 = vst [vmem:[#allocation5_spill] sm:$0xff] %v6350_v61  ;;  %2804 = vmatpush1.bf16.msra.mxu0 %v6154_v20  ;;  %2845 = vmatpush1.bf16.msra.mxu1 %v6159_v21 }
 0x124   :  { %v6354_v62 = vpop.f32.mrf.mxu0  ;;  %v6356_v63 = vpop.f32.mrf.mxu1  ;;  %2805 = vmatprep.subr.bf16.mxu0 %v6166_v22  ;;  %2846 = vmatprep.subr.bf16.mxu1 %v6171_v23 }
 0x125   :  { %6932 = vst [vmem:[#allocation6_spill] sm:$0xff] %v6356_v63  ;;  %2835 = vmatprep.mubr.bf16.mxu0 %v6929_v1  ;;  %2876 = vmatprep.mubr.bf16.mxu1 %v6929_v1 }
 0x126   :  { %v848_v0 = vpop.f32.mrf.mxu0  ;;  %v889_v2 = vpop.f32.mrf.mxu1 }
 0x127   :  { %2806 = vmatpush1.bf16.msra.mxu0 %v6182_v26  ;;  %2847 = vmatpush1.bf16.msra.mxu1 %v6187_v27 }
 0x128   :  { %v849_v3 = vpop.f32.mrf.mxu0  ;;  %v890_v4 = vpop.f32.mrf.mxu1  ;;  %2807 = vmatprep.subr.bf16.mxu0 %v6198_v30  ;;  %2848 = vmatprep.subr.bf16.mxu1 %v6203_v31 }
 0x12b   :  { %2808 = vmatpush1.bf16.msra.mxu0 %v6212_v34  ;;  %2849 = vmatpush1.bf16.msra.mxu1 %v6217_v35 }
 0x12c   :  { %2809 = vmatprep.subr.bf16.mxu0 %v6224_v38  ;;  %2850 = vmatprep.subr.bf16.mxu1 %v6229_v39 }
 0x12f   :  { %2810 = vmatpush1.bf16.msra.mxu0 %v6236_v40  ;;  %2851 = vmatpush1.bf16.msra.mxu1 %v6241_v41 }
 0x130   :  { %2811 = vmatprep.subr.bf16.mxu0 %v6248_v42  ;;  %2852 = vmatprep.subr.bf16.mxu1 %v6253_v43 }
 0x133   :  { %2812 = vmatpush1.bf16.msra.mxu0 %v6260_v44  ;;  %2853 = vmatpush1.bf16.msra.mxu1 %v6265_v45 }
 0x134   :  { %2813 = vmatprep.subr.bf16.mxu0 %v6272_v46  ;;  %2854 = vmatprep.subr.bf16.mxu1 %v6277_v47 }
 0x137   :  { %2814 = vmatpush1.bf16.msra.mxu0 %v6284_v48  ;;  %2855 = vmatpush1.bf16.msra.mxu1 %v6289_v49 }
 0x138   :  { %2815 = vmatprep.subr.bf16.mxu0 %v6296_v50  ;;  %2856 = vmatprep.subr.bf16.mxu1 %v6301_v51 }
 0x13b   :  { %2816 = vmatpush1.bf16.msra.mxu0 %v6308_v52  ;;  %2857 = vmatpush1.bf16.msra.mxu1 %v6313_v53 }
 0x13c   :  { %2817 = vmatprep.subr.bf16.mxu0 %v6320_v54  ;;  %2858 = vmatprep.subr.bf16.mxu1 %v6325_v55 }
 0x13f   :  { %2818 = vmatpush1.bf16.msra.mxu0 %v6332_v56  ;;  %2859 = vmatpush1.bf16.msra.mxu1 %v6337_v57 }
 0x140   :  { %3106 = vmatprep.subr.bf16.mxu0 %v6141_v17  ;;  %3147 = vmatprep.subr.bf16.mxu1 %v6146_v18 }
 0x142   :  { %v6390_v5 = vpop.f32.mrf.mxu0  ;;  %v6392_v6 = vpop.f32.mrf.mxu1 }
 0x143   :  { %6933 = vst [vmem:[#allocation7_spill] sm:$0xff] %v6390_v5  ;;  %6934 = vst [vmem:[#allocation8_spill] sm:$0xff] %v6392_v6 }
 0x144   :  { %v6394_v7 = vpop.f32.mrf.mxu0  ;;  %v6396_v8 = vpop.f32.mrf.mxu1 }
 0x145   :  { %6935 = vst [vmem:[#allocation9_spill] sm:$0xff] %v6394_v7  ;;  %6936 = vst [vmem:[#allocation10_spill] sm:$0xff] %v6396_v8 }
 0x146   :  { %v1129_v13 = vpop.f32.mrf.mxu0  ;;  %v1170_v14 = vpop.f32.mrf.mxu1 }
 0x148   :  { %v1130_v15 = vpop.f32.mrf.mxu0  ;;  %v1171_v16 = vpop.f32.mrf.mxu1 }
 0x162   :  { %v6398_v19 = vpop.f32.mrf.mxu0  ;;  %v6400_v32 = vpop.f32.mrf.mxu1 }
 0x163   :  { %6937 = vst [vmem:[#allocation11_spill] sm:$0xff] %v6398_v19  ;;  %6938 = vst [vmem:[#allocation12_spill] sm:$0xff] %v6400_v32 }
 0x164   :  { %v6402_v33 = vpop.f32.mrf.mxu0  ;;  %v6404_v36 = vpop.f32.mrf.mxu1 }
 0x165   :  { %6939 = vst [vmem:[#allocation13_spill] sm:$0xff] %v6402_v33  ;;  %6940 = vst [vmem:[#allocation14_spill] sm:$0xff] %v6404_v36 }
 0x166   :  { %v1410_v37 = vpop.f32.mrf.mxu0  ;;  %v1451_v58 = vpop.f32.mrf.mxu1 }
 0x168   :  { %v1411_v59 = vpop.f32.mrf.mxu0  ;;  %v1452_v0 = vpop.f32.mrf.mxu1 }
 0x182   :  { %v6406_v2 = vpop.f32.mrf.mxu0  ;;  %v6408_v3 = vpop.f32.mrf.mxu1 }
 0x183   :  { %6941 = vst [vmem:[#allocation15_spill] sm:$0xff] %v6406_v2  ;;  %6942 = vst [vmem:[#allocation16_spill] sm:$0xff] %v6408_v3 }
 0x184   :  { %v6410_v4 = vpop.f32.mrf.mxu0  ;;  %v6412_v13 = vpop.f32.mrf.mxu1 }
 0x185   :  { %6943 = vst [vmem:[#allocation17_spill] sm:$0xff] %v6410_v4  ;;  %6944 = vst [vmem:[#allocation18_spill] sm:$0xff] %v6412_v13  ;;  %v69_v13 = vlaneseq }
 0x186   :  { %v1691_v14 = vpop.f32.mrf.mxu0  ;;  %v1732_v15 = vpop.f32.mrf.mxu1 }
 0x188   :  { %v1692_v16 = vpop.f32.mrf.mxu0  ;;  %v1733_v1 = vpop.f32.mrf.mxu1 }
 0x1a2   :  { %v6414_v32 = vpop.f32.mrf.mxu0  ;;  %v6416_v33 = vpop.f32.mrf.mxu1 }
 0x1a3   :  { %6945 = vst [vmem:[#allocation19_spill] sm:$0xff] %v6414_v32  ;;  %6946 = vst [vmem:[#allocation20_spill] sm:$0xff] %v6416_v33 }
 0x1a4   :  { %v6418_v37 = vpop.f32.mrf.mxu0  ;;  %v6420_v58 = vpop.f32.mrf.mxu1 }
 0x1a5   :  { %6947 = vst [vmem:[#allocation21_spill] sm:$0xff] %v6418_v37  ;;  %6948 = vst [vmem:[#allocation22_spill] sm:$0xff] %v6420_v58  ;;  %v70_v37 = vshrl.u32 %v69_v13, 7 }
 0x1a6   :  { %v1972_v59 = vpop.f32.mrf.mxu0  ;;  %v2013_v0 = vpop.f32.mrf.mxu1 }
 0x1a7   :  { %v71_v19 = vsub.s32 0, %v70_v37  ;;  %v79_v0 = vsub.s32 2, %v70_v37  ;;  %v83_v58 = vsub.s32 3, %v70_v37 }
 0x1a8   :  { %v1973_v2 = vpop.f32.mrf.mxu0  ;;  %v2014_v3 = vpop.f32.mrf.mxu1 }
 0x1a9   :  { %v34_v2 = vld [vmem:[%s6925_s3] sm:$0xf]  ;;  %v75_v3 = vsub.s32 1, %v70_v37 }
 0x1aa   :  { %v6433_v59 = vrot.slane %v34_v2, %v71_v19  ;;  %v6445_v61 = vrot.slane %v34_v2, %v83_v58 }
 0x1c2   :  { %v6422_v36 = vpop.f32.mrf.mxu0  ;;  %v6424_v4 = vpop.f32.mrf.mxu1 }
 0x1c3   :  { %6949 = vst [vmem:[#allocation23_spill] sm:$0xff] %v6422_v36  ;;  %6950 = vst [vmem:[#allocation24_spill] sm:$0xff] %v6424_v4  ;;  %v6435_v4 = vrot.slane %v34_v2, %v75_v3 }
 0x1c4   :  { %v6426_v14 = vpop.f32.mrf.mxu0  ;;  %v6428_v15 = vpop.f32.mrf.mxu1 }
 0x1c5   :  { %6951 = vst [vmem:[#allocation25_spill] sm:$0xff] %v6426_v14  ;;  %6952 = vst [vmem:[#allocation26_spill] sm:$0xff] %v6428_v15  ;;  %v284_v15 = vadd.f32 %v6114_v9, %v6433_v59  ;;  %v286_v13 = vadd.f32 %v6120_v11, %v6435_v4  ;;  %v327_v11 = vadd.f32 %v6124_v12, %v6445_v61 }
 0x1c6   :  { %v2253_v1 = vpop.f32.mrf.mxu0  ;;  %v2294_v16 = vpop.f32.mrf.mxu1 }
 0x1c7   :  { %v6439_v1 = vrot.slane %v34_v2, %v79_v0 }
 0x1c8   :  { %v2254_v32 = vpop.f32.mrf.mxu0  ;;  %v2295_v33 = vpop.f32.mrf.mxu1 }
 0x1c9   :  { %v325_v19 = vadd.f32 %v6116_v10, %v6439_v1 }
 0x1e2   :  { %v2535_v32 = vpop.f32.mrf.mxu0  ;;  %v2576_v33 = vpop.f32.mrf.mxu1 }
 0x1e3   :  { %v2583_v16 = vadd.f32 %v2535_v32, %v284_v15  ;;  %v2585_v9 = vadd.f32 %v2576_v33, %v325_v19 }
 0x1e4   :  { %v2537_v14 = vpop.f32.mrf.mxu0  ;;  %v2578_v36 = vpop.f32.mrf.mxu1 }
 0x1e5   :  { %v2587_v8 = vmul.f32 0.5, %v2583_v16  ;;  %v2584_v3 = vadd.f32 %v2537_v14, %v286_v13  ;;  %v2586_v15 = vadd.f32 %v2578_v36, %v327_v11 }
 0x1e6   :  { %v2539_v6 = vpop.f32.mrf.mxu0  ;;  %v2580_v7 = vpop.f32.mrf.mxu1 }
 0x1e7   :  { %5460 = vtanh.f32 %v2587_v8  ;;  %v2591_v0 = vmul.f32 0.5, %v2584_v3  ;;  %v2596_v32 = vmul.f32 0.5, %v2586_v15 }
 0x1e8   :  { %v2540_v5 = vpop.f32.mrf.mxu0  ;;  %v2581_v63 = vpop.f32.mrf.mxu1 }
 0x1e9   :  { %5462 = vtanh.f32 %v2591_v0  ;;  %v32_v63 = vld [vmem:[%s6926_s5] sm:$0xff]  ;;  %v564_v0 = vadd.f32 %v6173_v24, %v6433_v59 }
 0x1ea   :  { %5464 = vtanh.f32 %v2585_v9  ;;  %v6953_v9 = vmov 0  }
 0x1eb   :  { %5466 = vtanh.f32 %v2596_v32  ;;  %v566_v32 = vadd.f32 %v6189_v28, %v6435_v4  ;;  %v607_v28 = vadd.f32 %v6193_v29, %v6445_v61 }
 0x1f4   :  { %v5461_v10 = vpop.eup %5460 }
 0x1f5   :  { %v2589_v37 = vadd.f32 1.0, %v5461_v10 }
 0x1f6   :  { %v5463_v16 = vpop.eup %5462 }
 0x1f7   :  { %v2590_v14 = vmul.f32 0.5, %v2589_v37  ;;  %v2593_v6 = vadd.f32 1.0, %v5463_v16  ;;  %v5465_v7 = vpop.eup %5464 }
 0x1f8   :  { %v5467_v12 = vpop.eup %5466 }
 0x1f9   :  { %v2594_v5 = vmul.f32 0.5, %v2593_v6  ;;  %v2601_v8 = vmul.f32 %v5465_v7, %v2590_v14  ;;  %v2598_v36 = vadd.f32 1.0, %v5467_v12  ;;  %v605_v14 = vadd.f32 %v6175_v25, %v6439_v1 }
 0x1fb   :  { %v2600_v58 = vmul.f32 %v2594_v5, %v32_v63  ;;  %v2599_v33 = vmul.f32 0.5, %v2598_v36 }
 0x1fd   :  { %v6452_v2 = vadd.f32 %v2601_v8, %v2600_v58 }
 0x1ff   :  { %5468 = vtanh.f32 %v6452_v2 }
 0x20c   :  { %v5469_v13 = vpop.eup %5468 }
 0x20d   :  { %v2604_v19 = vmul.f32 %v5469_v13, %v2599_v33 }
 0x20f   :  { %2605 = vst [vmem:[%s6927_s6] sm:$0xff] %v2604_v19  ;;  %v2610_v3 = vpack.c.bf16 %v2604_v19, %v2604_v19 }
 0x211   :  { %2836 = vmatmul.mubr.bf16.vlgmr.msra.gmra.mxu0 %v2610_v3  ;;  %2877 = vmatmul.mubr.bf16.vlgmr.msra.gmra.mxu1 %v2610_v3 }
 0x212   :  { %3107 = vmatpush1.bf16.msra.mxu0 %v6154_v20  ;;  %3148 = vmatpush1.bf16.msra.mxu1 %v6159_v21 }
 0x213   :  { %3108 = vmatprep.subr.bf16.mxu0 %v6166_v22  ;;  %3149 = vmatprep.subr.bf16.mxu1 %v6171_v23 }
 0x214   :  { %3138 = vmatprep.mubr.bf16.mxu0 %v6953_v9  ;;  %3179 = vmatprep.mubr.bf16.mxu1 %v6953_v9 }
 0x216   :  { %3109 = vmatpush1.bf16.msra.mxu0 %v6182_v26  ;;  %3150 = vmatpush1.bf16.msra.mxu1 %v6187_v27 }
 0x217   :  { %3110 = vmatprep.subr.bf16.mxu0 %v6198_v30  ;;  %3151 = vmatprep.subr.bf16.mxu1 %v6203_v31 }
 0x21a   :  { %3111 = vmatpush1.bf16.msra.mxu0 %v6212_v34  ;;  %3152 = vmatpush1.bf16.msra.mxu1 %v6217_v35 }
 0x21b   :  { %3112 = vmatprep.subr.bf16.mxu0 %v6224_v38  ;;  %3153 = vmatprep.subr.bf16.mxu1 %v6229_v39 }
 0x21e   :  { %3113 = vmatpush1.bf16.msra.mxu0 %v6236_v40  ;;  %3154 = vmatpush1.bf16.msra.mxu1 %v6241_v41 }
 0x21f   :  { %3114 = vmatprep.subr.bf16.mxu0 %v6248_v42  ;;  %3155 = vmatprep.subr.bf16.mxu1 %v6253_v43 }
 0x222   :  { %3115 = vmatpush1.bf16.msra.mxu0 %v6260_v44  ;;  %3156 = vmatpush1.bf16.msra.mxu1 %v6265_v45 }
 0x223   :  { %3116 = vmatprep.subr.bf16.mxu0 %v6272_v46  ;;  %3157 = vmatprep.subr.bf16.mxu1 %v6277_v47 }
 0x226   :  { %3117 = vmatpush1.bf16.msra.mxu0 %v6284_v48  ;;  %3158 = vmatpush1.bf16.msra.mxu1 %v6289_v49 }
 0x227   :  { %3118 = vmatprep.subr.bf16.mxu0 %v6296_v50  ;;  %3159 = vmatprep.subr.bf16.mxu1 %v6301_v51 }
 0x22a   :  { %3119 = vmatpush1.bf16.msra.mxu0 %v6308_v52  ;;  %3160 = vmatpush1.bf16.msra.mxu1 %v6313_v53 }
 0x22b   :  { %3120 = vmatprep.subr.bf16.mxu0 %v6320_v54  ;;  %3161 = vmatprep.subr.bf16.mxu1 %v6325_v55 }
 0x22e   :  { %3121 = vmatpush1.bf16.msra.mxu0 %v6332_v56  ;;  %3162 = vmatpush1.bf16.msra.mxu1 %v6337_v57 }
 0x22f   :  { %3409 = vmatprep.subr.bf16.mxu0 %v6141_v17  ;;  %3450 = vmatprep.subr.bf16.mxu1 %v6146_v18 }
 0x2d1   :  { %v2837_v11 = vpop.f32.mrf.mxu0  ;;  %v2878_v15 = vpop.f32.mrf.mxu1 }
 0x2d2   :  { %v2885_v10 = vadd.f32 %v2837_v11, %v564_v0  ;;  %v2887_v18 = vadd.f32 %v2878_v15, %v605_v14 }
 0x2d3   :  { %v2839_v37 = vpop.f32.mrf.mxu0  ;;  %v2880_v16 = vpop.f32.mrf.mxu1 }
 0x2d4   :  { %v2889_v6 = vmul.f32 0.5, %v2885_v10  ;;  %v2886_v7 = vadd.f32 %v2839_v37, %v566_v32  ;;  %v2888_v58 = vadd.f32 %v2880_v16, %v607_v28  ;;  %v6574_v28 = vld [vmem:[%s6923_s2 + $0xe8] ss:$16 sps:$4 sm:$0xff]  }
 0x2d5   :  { %v2841_v63 = vpop.f32.mrf.mxu0  ;;  %v2882_v17 = vpop.f32.mrf.mxu1 }
 0x2d6   :  { %5470 = vtanh.f32 %v2889_v6  ;;  %v2893_v5 = vmul.f32 0.5, %v2886_v7  ;;  %v2898_v12 = vmul.f32 0.5, %v2888_v58  ;;  %v6583_v58 = vld [vmem:[%s6923_s2 + $0xc4] ss:$16 sps:$4 sm:$0xff]  }
 0x2d7   :  { %v2842_v8 = vpop.f32.mrf.mxu0  ;;  %v2883_v24 = vpop.f32.mrf.mxu1 }
 0x2d8   :  { %5472 = vtanh.f32 %v2893_v5  ;;  %v6559_v5 = vld [vmem:[%s6923_s2 + $0xe4] ss:$16 sps:$4 sm:$0xff]   ;;  %v6564_v8 = vld [vmem:[%s6923_s2 + $0xec] ss:$16 sps:$4 sm:$0xff]   ;;  %v6569_v24 = vld [vmem:[%s6923_s2 + $0xe0] ss:$16 sps:$4 sm:$0xff]  }
 0x2d9   :  { %5474 = vtanh.f32 %v2887_v18 }
 0x2da   :  { %5476 = vtanh.f32 %v2898_v12  ;;  %v6588_v12 = vld [vmem:[%s6923_s2 + $0xcc] ss:$16 sps:$4 sm:$0xff]  }
 0x2e3   :  { %v5471_v36 = vpop.eup %5470 }
 0x2e4   :  { %v2891_v33 = vadd.f32 1.0, %v5471_v36  ;;  %v6593_v36 = vld [vmem:[%s6923_s2 + $0xc0] ss:$16 sps:$4 sm:$0xff]  }
 0x2e5   :  { %v5473_v13 = vpop.eup %5472 }
 0x2e6   :  { %v2892_v25 = vmul.f32 0.5, %v2891_v33  ;;  %v2895_v19 = vadd.f32 1.0, %v5473_v13  ;;  %v5475_v3 = vpop.eup %5474  ;;  %v6598_v33 = vld [vmem:[%s6923_s2 + $0xc8] ss:$16 sps:$4 sm:$0xff]   ;;  %v6607_v13 = vld [vmem:[%s6923_s2 + $0xa4] ss:$16 sps:$4 sm:$0xff]  }
 0x2e7   :  { %v5477_v10 = vpop.eup %5476 }
 0x2e8   :  { %v2896_v0 = vmul.f32 0.5, %v2895_v19  ;;  %v2903_v11 = vmul.f32 %v5475_v3, %v2892_v25  ;;  %v2900_v37 = vadd.f32 1.0, %v5477_v10  ;;  %v6612_v25 = vld [vmem:[%s6923_s2 + $0xac] ss:$16 sps:$4 sm:$0xff]   ;;  %v6617_v19 = vld [vmem:[%s6923_s2 + $0xa0] ss:$16 sps:$4 sm:$0xff]  }
 0x2e9   :  { %v6622_v3 = vld [vmem:[%s6923_s2 + $0xa8] ss:$16 sps:$4 sm:$0xff]   ;;  %v6655_v10 = vld [vmem:[%s6923_s2 + $0x64] ss:$16 sps:$4 sm:$0xff]  }
 0x2ea   :  { %v2902_v15 = vmul.f32 %v2896_v0, %v6452_v2  ;;  %v2901_v29 = vmul.f32 0.5, %v2900_v37  ;;  %v6631_v0 = vld [vmem:[%s6923_s2 + $0x84] ss:$16 sps:$4 sm:$0xff]   ;;  %v6660_v37 = vld [vmem:[%s6923_s2 + $0x6c] ss:$16 sps:$4 sm:$0xff]  }
 0x2ec   :  { %v6501_v32 = vadd.f32 %v2903_v11, %v2902_v15  ;;  %v6636_v11 = vld [vmem:[%s6923_s2 + $0x8c] ss:$16 sps:$4 sm:$0xff]   ;;  %v6641_v15 = vld [vmem:[%s6923_s2 + $0x80] ss:$16 sps:$4 sm:$0xff]  }
 0x2ee   :  { %5478 = vtanh.f32 %v6501_v32 }
 0x2fb   :  { %v5479_v16 = vpop.eup %5478 }
 0x2fc   :  { %v2906_v14 = vmul.f32 %v5479_v16, %v2901_v29  ;;  %v6665_v29 = vld [vmem:[%s6923_s2 + $0x60] ss:$16 sps:$4 sm:$0xff]   ;;  %v6670_v16 = vld [vmem:[%s6923_s2 + $0x68] ss:$16 sps:$4 sm:$0xff]  }
 0x2fe   :  { %5068 = vst [vmem:[%s6927_s6 + $0x8] sm:$0xff] %v2906_v14  ;;  %v2913_v6 = vpack.c.bf16 %v2906_v14, %v2906_v14  ;;  %v6679_v14 = vld [vmem:[%s6923_s2 + $0x44] ss:$16 sps:$4 sm:$0xff]  }
 0x300   :  { %3139 = vmatmul.mubr.bf16.vlgmr.msra.gmra.mxu0 %v2913_v6  ;;  %3180 = vmatmul.mubr.bf16.vlgmr.msra.gmra.mxu1 %v2913_v6  ;;  %v6684_v6 = vld [vmem:[%s6923_s2 + $0x4c] ss:$16 sps:$4 sm:$0xff]  }
 0x301   :  { %3410 = vmatpush1.bf16.msra.mxu0 %v6154_v20  ;;  %3451 = vmatpush1.bf16.msra.mxu1 %v6159_v21  ;;  %v845_v20 = vadd.f32 %v6348_v60, %v6433_v59 }
 0x302   :  { %3411 = vmatprep.subr.bf16.mxu0 %v6166_v22  ;;  %3452 = vmatprep.subr.bf16.mxu1 %v6171_v23  ;;  %v847_v23 = vadd.f32 %v6354_v62, %v6435_v4 }
 0x303   :  { %3441 = vmatprep.mubr.bf16.mxu0 %v6953_v9  ;;  %3482 = vmatprep.mubr.bf16.mxu1 %v6953_v9 }
 0x305   :  { %3412 = vmatpush1.bf16.msra.mxu0 %v6182_v26  ;;  %3453 = vmatpush1.bf16.msra.mxu1 %v6187_v27 }
 0x306   :  { %3413 = vmatprep.subr.bf16.mxu0 %v6198_v30  ;;  %3454 = vmatprep.subr.bf16.mxu1 %v6203_v31  ;;  %v6954_v31 = vld [vmem:[#allocation5_spill] sm:$0xff] }
 0x309   :  { %3414 = vmatpush1.bf16.msra.mxu0 %v6212_v34  ;;  %3455 = vmatpush1.bf16.msra.mxu1 %v6217_v35  ;;  %v886_v34 = vadd.f32 %v6954_v31, %v6439_v1  ;;  %v6732_v31 = vld [vmem:[%s6923_s2 + $0xc] ss:$16 sps:$4 sm:$0xff]  }
 0x30a   :  { %3415 = vmatprep.subr.bf16.mxu0 %v6224_v38  ;;  %3456 = vmatprep.subr.bf16.mxu1 %v6229_v39 }
 0x30d   :  { %3416 = vmatpush1.bf16.msra.mxu0 %v6236_v40  ;;  %3457 = vmatpush1.bf16.msra.mxu1 %v6241_v41 }
 0x30e   :  { %3417 = vmatprep.subr.bf16.mxu0 %v6248_v42  ;;  %3458 = vmatprep.subr.bf16.mxu1 %v6253_v43 }
 0x311   :  { %3418 = vmatpush1.bf16.msra.mxu0 %v6260_v44  ;;  %3459 = vmatpush1.bf16.msra.mxu1 %v6265_v45  ;;  %v6955_v45 = vld [vmem:[#allocation6_spill] sm:$0xff] }
 0x312   :  { %3419 = vmatprep.subr.bf16.mxu0 %v6272_v46  ;;  %3460 = vmatprep.subr.bf16.mxu1 %v6277_v47  ;;  %v888_v46 = vadd.f32 %v6955_v45, %v6445_v61 }
 0x315   :  { %3420 = vmatpush1.bf16.msra.mxu0 %v6284_v48  ;;  %3461 = vmatpush1.bf16.msra.mxu1 %v6289_v49 }
 0x316   :  { %3421 = vmatprep.subr.bf16.mxu0 %v6296_v50  ;;  %3462 = vmatprep.subr.bf16.mxu1 %v6301_v51 }
 0x319   :  { %3422 = vmatpush1.bf16.msra.mxu0 %v6308_v52  ;;  %3463 = vmatpush1.bf16.msra.mxu1 %v6313_v53 }
 0x31a   :  { %3423 = vmatprep.subr.bf16.mxu0 %v6320_v54  ;;  %3464 = vmatprep.subr.bf16.mxu1 %v6325_v55 }
 0x31d   :  { %3424 = vmatpush1.bf16.msra.mxu0 %v6332_v56  ;;  %3465 = vmatpush1.bf16.msra.mxu1 %v6337_v57 }
 0x31e   :  { %3712 = vmatprep.subr.bf16.mxu0 %v6559_v5  ;;  %3753 = vmatprep.subr.bf16.mxu1 %v6564_v8 }
 0x3c0   :  { %v3140_v21 = vpop.f32.mrf.mxu0  ;;  %v3181_v22 = vpop.f32.mrf.mxu1 }
 0x3c1   :  { %v3188_v26 = vadd.f32 %v3140_v21, %v845_v20  ;;  %v3190_v41 = vadd.f32 %v3181_v22, %v886_v34  ;;  %v6689_v20 = vld [vmem:[%s6923_s2 + $0x40] ss:$16 sps:$4 sm:$0xff]   ;;  %v6694_v21 = vld [vmem:[%s6923_s2 + $0x48] ss:$16 sps:$4 sm:$0xff]   ;;  %v6703_v22 = vld [vmem:[%s6923_s2 + $0x24] ss:$16 sps:$4 sm:$0xff]  }
 0x3c2   :  { %v3142_v27 = vpop.f32.mrf.mxu0  ;;  %v3183_v30 = vpop.f32.mrf.mxu1  ;;  %v6737_v34 = vld [vmem:[%s6923_s2] ss:$16 sps:$4 sm:$0xff]  }
 0x3c3   :  { %v3192_v35 = vmul.f32 0.5, %v3188_v26  ;;  %v3189_v38 = vadd.f32 %v3142_v27, %v847_v23  ;;  %v3191_v47 = vadd.f32 %v3183_v30, %v888_v46  ;;  %v6708_v23 = vld [vmem:[%s6923_s2 + $0x2c] ss:$16 sps:$4 sm:$0xff]   ;;  %v6713_v26 = vld [vmem:[%s6923_s2 + $0x20] ss:$16 sps:$4 sm:$0xff]  }
 0x3c4   :  { %v3144_v39 = vpop.f32.mrf.mxu0  ;;  %v3185_v40 = vpop.f32.mrf.mxu1  ;;  %v6718_v27 = vld [vmem:[%s6923_s2 + $0x28] ss:$16 sps:$4 sm:$0xff]   ;;  %v6727_v30 = vld [vmem:[%s6923_s2 + $0x4] ss:$16 sps:$4 sm:$0xff]  }
 0x3c5   :  { %5480 = vtanh.f32 %v3192_v35  ;;  %v3196_v42 = vmul.f32 0.5, %v3189_v38  ;;  %v3201_v48 = vmul.f32 0.5, %v3191_v47  ;;  %v6742_v35 = vld [vmem:[%s6923_s2 + $0x8] ss:$16 sps:$4 sm:$0xff]   ;;  %v6956_v38 = vld [vmem:[#allocation7_spill] sm:$0xff] }
 0x3c6   :  { %v3145_v43 = vpop.f32.mrf.mxu0  ;;  %v3186_v44 = vpop.f32.mrf.mxu1  ;;  %v1126_v39 = vadd.f32 %v6956_v38, %v6433_v59  ;;  %v6958_v47 = vld [vmem:[#allocation8_spill] sm:$0xff] }
 0x3c7   :  { %5482 = vtanh.f32 %v3196_v42  ;;  %v6957_v42 = vld [vmem:[#allocation9_spill] sm:$0xff] }
 0x3c8   :  { %5484 = vtanh.f32 %v3190_v41  ;;  %v1128_v43 = vadd.f32 %v6957_v42, %v6435_v4 }
 0x3c9   :  { %5486 = vtanh.f32 %v3201_v48  ;;  %v1167_v48 = vadd.f32 %v6958_v47, %v6439_v1 }
 0x3d2   :  { %v5481_v49 = vpop.eup %5480 }
 0x3d3   :  { %v3194_v50 = vadd.f32 1.0, %v5481_v49 }
 0x3d4   :  { %v5483_v51 = vpop.eup %5482 }
 0x3d5   :  { %v3195_v52 = vmul.f32 0.5, %v3194_v50  ;;  %v3198_v53 = vadd.f32 1.0, %v5483_v51  ;;  %v5485_v54 = vpop.eup %5484 }
 0x3d6   :  { %v5487_v62 = vpop.eup %5486 }
 0x3d7   :  { %v3199_v55 = vmul.f32 0.5, %v3198_v53  ;;  %v3206_v56 = vmul.f32 %v5485_v54, %v3195_v52  ;;  %v3203_v2 = vadd.f32 1.0, %v5487_v62 }
 0x3d9   :  { %v3205_v57 = vmul.f32 %v3199_v55, %v6501_v32  ;;  %v3204_v7 = vmul.f32 0.5, %v3203_v2  ;;  %v6646_v32 = vld [vmem:[%s6923_s2 + $0x88] ss:$16 sps:$4 sm:$0xff]  }
 0x3db   :  { %v6548_v60 = vadd.f32 %v3206_v56, %v3205_v57  ;;  %v6959_v57 = vld [vmem:[#allocation10_spill] sm:$0xff] }
 0x3dc   :  { %v1169_v62 = vadd.f32 %v6959_v57, %v6445_v61 }
 0x3dd   :  { %5488 = vtanh.f32 %v6548_v60 }
 0x3ea   :  { %v5489_v63 = vpop.eup %5488 }
 0x3eb   :  { %v3209_v17 = vmul.f32 %v5489_v63, %v3204_v7 }
 0x3ed   :  { %5101 = vst [vmem:[%s6927_s6 + $0x10] sm:$0xff] %v3209_v17  ;;  %v3216_v18 = vpack.c.bf16 %v3209_v17, %v3209_v17 }
 0x3ef   :  { %3442 = vmatmul.mubr.bf16.vlgmr.msra.gmra.mxu0 %v3216_v18  ;;  %3483 = vmatmul.mubr.bf16.vlgmr.msra.gmra.mxu1 %v3216_v18 }
 0x3f0   :  { %3744 = vmatprep.mubr.bf16.mxu0 %v6953_v9  ;;  %3785 = vmatprep.mubr.bf16.mxu1 %v6953_v9 }
 0x3f1   :  { %3713 = vmatpush1.bf16.msra.mxu0 %v6569_v24  ;;  %3754 = vmatpush1.bf16.msra.mxu1 %v6574_v28 }
 0x3f2   :  { %3714 = vmatprep.subr.bf16.mxu0 %v6583_v58  ;;  %3755 = vmatprep.subr.bf16.mxu1 %v6588_v12 }
 0x3f5   :  { %3715 = vmatpush1.bf16.msra.mxu0 %v6593_v36  ;;  %3756 = vmatpush1.bf16.msra.mxu1 %v6598_v33 }
 0x3f6   :  { %3716 = vmatprep.subr.bf16.mxu0 %v6607_v13  ;;  %3757 = vmatprep.subr.bf16.mxu1 %v6612_v25 }
 0x3f9   :  { %3717 = vmatpush1.bf16.msra.mxu0 %v6617_v19  ;;  %3758 = vmatpush1.bf16.msra.mxu1 %v6622_v3 }
 0x3fa   :  { %3718 = vmatprep.subr.bf16.mxu0 %v6631_v0  ;;  %3759 = vmatprep.subr.bf16.mxu1 %v6636_v11 }
 0x3fd   :  { %3719 = vmatpush1.bf16.msra.mxu0 %v6641_v15  ;;  %3760 = vmatpush1.bf16.msra.mxu1 %v6646_v32 }
 0x3fe   :  { %3720 = vmatprep.subr.bf16.mxu0 %v6655_v10  ;;  %3761 = vmatprep.subr.bf16.mxu1 %v6660_v37 }
 0x401   :  { %3721 = vmatpush1.bf16.msra.mxu0 %v6665_v29  ;;  %3762 = vmatpush1.bf16.msra.mxu1 %v6670_v16 }
 0x402   :  { %3722 = vmatprep.subr.bf16.mxu0 %v6679_v14  ;;  %3763 = vmatprep.subr.bf16.mxu1 %v6684_v6 }
 0x405   :  { %3723 = vmatpush1.bf16.msra.mxu0 %v6689_v20  ;;  %3764 = vmatpush1.bf16.msra.mxu1 %v6694_v21 }
 0x406   :  { %3724 = vmatprep.subr.bf16.mxu0 %v6703_v22  ;;  %3765 = vmatprep.subr.bf16.mxu1 %v6708_v23 }
 0x409   :  { %3725 = vmatpush1.bf16.msra.mxu0 %v6713_v26  ;;  %3766 = vmatpush1.bf16.msra.mxu1 %v6718_v27 }
 0x40a   :  { %3726 = vmatprep.subr.bf16.mxu0 %v6727_v30  ;;  %3767 = vmatprep.subr.bf16.mxu1 %v6732_v31 }
 0x40d   :  { %3727 = vmatpush1.bf16.msra.mxu0 %v6737_v34  ;;  %3768 = vmatpush1.bf16.msra.mxu1 %v6742_v35 }
 0x40e   :  { %4015 = vmatprep.subr.bf16.mxu0 %v6559_v5  ;;  %4056 = vmatprep.subr.bf16.mxu1 %v6564_v8 }
 0x4af   :  { %v3443_v40 = vpop.f32.mrf.mxu0  ;;  %v3484_v41 = vpop.f32.mrf.mxu1 }
 0x4b0   :  { %v3491_v44 = vadd.f32 %v3443_v40, %v1126_v39  ;;  %v3493_v53 = vadd.f32 %v3484_v41, %v1167_v48 }
 0x4b1   :  { %v3445_v45 = vpop.f32.mrf.mxu0  ;;  %v3486_v46 = vpop.f32.mrf.mxu1 }
 0x4b2   :  { %v3495_v49 = vmul.f32 0.5, %v3491_v44  ;;  %v3492_v50 = vadd.f32 %v3445_v45, %v1128_v43  ;;  %v3494_v2 = vadd.f32 %v3486_v46, %v1169_v62 }
 0x4b3   :  { %v3447_v51 = vpop.f32.mrf.mxu0  ;;  %v3488_v52 = vpop.f32.mrf.mxu1 }
 0x4b4   :  { %5490 = vtanh.f32 %v3495_v49  ;;  %v3499_v54 = vmul.f32 0.5, %v3492_v50  ;;  %v3504_v7 = vmul.f32 0.5, %v3494_v2  ;;  %v6962_v2 = vld [vmem:[#allocation12_spill] sm:$0xff] }
 0x4b5   :  { %v3448_v55 = vpop.f32.mrf.mxu0  ;;  %v3489_v56 = vpop.f32.mrf.mxu1 }
 0x4b6   :  { %5492 = vtanh.f32 %v3499_v54  ;;  %v6961_v54 = vld [vmem:[#allocation13_spill] sm:$0xff] }
 0x4b7   :  { %5494 = vtanh.f32 %v3493_v53  ;;  %v1409_v55 = vadd.f32 %v6961_v54, %v6435_v4 }
 0x4b8   :  { %5496 = vtanh.f32 %v3504_v7  ;;  %v1448_v7 = vadd.f32 %v6962_v2, %v6439_v1 }
 0x4c1   :  { %v5491_v63 = vpop.eup %5490 }
 0x4c2   :  { %v3497_v17 = vadd.f32 1.0, %v5491_v63 }
 0x4c3   :  { %v5493_v18 = vpop.eup %5492 }
 0x4c4   :  { %v3498_v38 = vmul.f32 0.5, %v3497_v17  ;;  %v3501_v39 = vadd.f32 1.0, %v5493_v18  ;;  %v5495_v40 = vpop.eup %5494 }
 0x4c5   :  { %v5497_v45 = vpop.eup %5496 }
 0x4c6   :  { %v3502_v42 = vmul.f32 0.5, %v3501_v39  ;;  %v3509_v43 = vmul.f32 %v5495_v40, %v3498_v38  ;;  %v3506_v47 = vadd.f32 1.0, %v5497_v45 }
 0x4c8   :  { %v3508_v41 = vmul.f32 %v3502_v42, %v6548_v60  ;;  %v3507_v48 = vmul.f32 0.5, %v3506_v47  ;;  %v6960_v60 = vld [vmem:[#allocation11_spill] sm:$0xff] }
 0x4c9   :  { %v1407_v51 = vadd.f32 %v6960_v60, %v6433_v59 }
 0x4ca   :  { %v6759_v44 = vadd.f32 %v3509_v43, %v3508_v41  ;;  %v6963_v41 = vld [vmem:[#allocation14_spill] sm:$0xff] }
 0x4cb   :  { %v1450_v45 = vadd.f32 %v6963_v41, %v6445_v61 }
 0x4cc   :  { %5498 = vtanh.f32 %v6759_v44 }
 0x4d9   :  { %v5499_v46 = vpop.eup %5498 }
 0x4da   :  { %v3512_v49 = vmul.f32 %v5499_v46, %v3507_v48 }
 0x4dc   :  { %5134 = vst [vmem:[%s6927_s6 + $0x18] sm:$0xff] %v3512_v49  ;;  %v3519_v50 = vpack.c.bf16 %v3512_v49, %v3512_v49 }
 0x4de   :  { %3745 = vmatmul.mubr.bf16.vlgmr.msra.gmra.mxu0 %v3519_v50  ;;  %3786 = vmatmul.mubr.bf16.vlgmr.msra.gmra.mxu1 %v3519_v50 }
 0x4df   :  { %4016 = vmatpush1.bf16.msra.mxu0 %v6569_v24  ;;  %4057 = vmatpush1.bf16.msra.mxu1 %v6574_v28 }
 0x4e0   :  { %4017 = vmatprep.subr.bf16.mxu0 %v6583_v58  ;;  %4058 = vmatprep.subr.bf16.mxu1 %v6588_v12 }
 0x4e1   :  { %4047 = vmatprep.mubr.bf16.mxu0 %v6953_v9  ;;  %4088 = vmatprep.mubr.bf16.mxu1 %v6953_v9 }
 0x4e3   :  { %4018 = vmatpush1.bf16.msra.mxu0 %v6593_v36  ;;  %4059 = vmatpush1.bf16.msra.mxu1 %v6598_v33 }
 0x4e4   :  { %4019 = vmatprep.subr.bf16.mxu0 %v6607_v13  ;;  %4060 = vmatprep.subr.bf16.mxu1 %v6612_v25 }
 0x4e7   :  { %4020 = vmatpush1.bf16.msra.mxu0 %v6617_v19  ;;  %4061 = vmatpush1.bf16.msra.mxu1 %v6622_v3 }
 0x4e8   :  { %4021 = vmatprep.subr.bf16.mxu0 %v6631_v0  ;;  %4062 = vmatprep.subr.bf16.mxu1 %v6636_v11 }
 0x4eb   :  { %4022 = vmatpush1.bf16.msra.mxu0 %v6641_v15  ;;  %4063 = vmatpush1.bf16.msra.mxu1 %v6646_v32 }
 0x4ec   :  { %4023 = vmatprep.subr.bf16.mxu0 %v6655_v10  ;;  %4064 = vmatprep.subr.bf16.mxu1 %v6660_v37 }
 0x4ef   :  { %4024 = vmatpush1.bf16.msra.mxu0 %v6665_v29  ;;  %4065 = vmatpush1.bf16.msra.mxu1 %v6670_v16 }
 0x4f0   :  { %4025 = vmatprep.subr.bf16.mxu0 %v6679_v14  ;;  %4066 = vmatprep.subr.bf16.mxu1 %v6684_v6 }
 0x4f3   :  { %4026 = vmatpush1.bf16.msra.mxu0 %v6689_v20  ;;  %4067 = vmatpush1.bf16.msra.mxu1 %v6694_v21 }
 0x4f4   :  { %4027 = vmatprep.subr.bf16.mxu0 %v6703_v22  ;;  %4068 = vmatprep.subr.bf16.mxu1 %v6708_v23 }
 0x4f7   :  { %4028 = vmatpush1.bf16.msra.mxu0 %v6713_v26  ;;  %4069 = vmatpush1.bf16.msra.mxu1 %v6718_v27 }
 0x4f8   :  { %4029 = vmatprep.subr.bf16.mxu0 %v6727_v30  ;;  %4070 = vmatprep.subr.bf16.mxu1 %v6732_v31 }
 0x4fb   :  { %4030 = vmatpush1.bf16.msra.mxu0 %v6737_v34  ;;  %4071 = vmatpush1.bf16.msra.mxu1 %v6742_v35 }
 0x4fc   :  { %4318 = vmatprep.subr.bf16.mxu0 %v6559_v5  ;;  %4359 = vmatprep.subr.bf16.mxu1 %v6564_v8 }
 0x59e   :  { %v3746_v52 = vpop.f32.mrf.mxu0  ;;  %v3787_v53 = vpop.f32.mrf.mxu1 }
 0x59f   :  { %v3794_v56 = vadd.f32 %v3746_v52, %v1407_v51  ;;  %v3796_v39 = vadd.f32 %v3787_v53, %v1448_v7 }
 0x5a0   :  { %v3748_v57 = vpop.f32.mrf.mxu0  ;;  %v3789_v62 = vpop.f32.mrf.mxu1 }
 0x5a1   :  { %v3798_v63 = vmul.f32 0.5, %v3794_v56  ;;  %v3795_v17 = vadd.f32 %v3748_v57, %v1409_v55  ;;  %v3797_v47 = vadd.f32 %v3789_v62, %v1450_v45 }
 0x5a2   :  { %v3750_v18 = vpop.f32.mrf.mxu0  ;;  %v3791_v38 = vpop.f32.mrf.mxu1 }
 0x5a3   :  { %5500 = vtanh.f32 %v3798_v63  ;;  %v3802_v40 = vmul.f32 0.5, %v3795_v17  ;;  %v3807_v48 = vmul.f32 0.5, %v3797_v47  ;;  %v6966_v47 = vld [vmem:[#allocation16_spill] sm:$0xff] }
 0x5a4   :  { %v3751_v42 = vpop.f32.mrf.mxu0  ;;  %v3792_v43 = vpop.f32.mrf.mxu1 }
 0x5a5   :  { %5502 = vtanh.f32 %v3802_v40  ;;  %v6965_v40 = vld [vmem:[#allocation17_spill] sm:$0xff] }
 0x5a6   :  { %5504 = vtanh.f32 %v3796_v39  ;;  %v1690_v42 = vadd.f32 %v6965_v40, %v6435_v4 }
 0x5a7   :  { %5506 = vtanh.f32 %v3807_v48  ;;  %v1729_v48 = vadd.f32 %v6966_v47, %v6439_v1 }
 0x5b0   :  { %v5501_v46 = vpop.eup %5500 }
 0x5b1   :  { %v3800_v49 = vadd.f32 1.0, %v5501_v46 }
 0x5b2   :  { %v5503_v50 = vpop.eup %5502 }
 0x5b3   :  { %v3801_v60 = vmul.f32 0.5, %v3800_v49  ;;  %v3804_v51 = vadd.f32 1.0, %v5503_v50  ;;  %v5505_v52 = vpop.eup %5504 }
 0x5b4   :  { %v5507_v57 = vpop.eup %5506 }
 0x5b5   :  { %v3805_v54 = vmul.f32 0.5, %v3804_v51  ;;  %v3812_v55 = vmul.f32 %v5505_v52, %v3801_v60  ;;  %v3809_v2 = vadd.f32 1.0, %v5507_v57 }
 0x5b7   :  { %v3811_v53 = vmul.f32 %v3805_v54, %v6759_v44  ;;  %v3810_v7 = vmul.f32 0.5, %v3809_v2  ;;  %v6964_v44 = vld [vmem:[#allocation15_spill] sm:$0xff]  ;;  %v6967_v54 = vld [vmem:[#allocation18_spill] sm:$0xff] }
 0x5b8   :  { %v1688_v18 = vadd.f32 %v6964_v44, %v6433_v59 }
 0x5b9   :  { %v6808_v56 = vadd.f32 %v3812_v55, %v3811_v53  ;;  %v1731_v55 = vadd.f32 %v6967_v54, %v6445_v61 }
 0x5bb   :  { %5508 = vtanh.f32 %v6808_v56 }
 0x5c8   :  { %v5509_v62 = vpop.eup %5508 }
 0x5c9   :  { %v3815_v63 = vmul.f32 %v5509_v62, %v3810_v7 }
 0x5cb   :  { %5167 = vst [vmem:[%s6927_s6 + $0x20] sm:$0xff] %v3815_v63  ;;  %v3822_v17 = vpack.c.bf16 %v3815_v63, %v3815_v63 }
 0x5cd   :  { %4048 = vmatmul.mubr.bf16.vlgmr.msra.gmra.mxu0 %v3822_v17  ;;  %4089 = vmatmul.mubr.bf16.vlgmr.msra.gmra.mxu1 %v3822_v17 }
 0x5ce   :  { %4319 = vmatpush1.bf16.msra.mxu0 %v6569_v24  ;;  %4360 = vmatpush1.bf16.msra.mxu1 %v6574_v28 }
 0x5cf   :  { %4320 = vmatprep.subr.bf16.mxu0 %v6583_v58  ;;  %4361 = vmatprep.subr.bf16.mxu1 %v6588_v12 }
 0x5d0   :  { %4350 = vmatprep.mubr.bf16.mxu0 %v6953_v9  ;;  %4391 = vmatprep.mubr.bf16.mxu1 %v6953_v9 }
 0x5d2   :  { %4321 = vmatpush1.bf16.msra.mxu0 %v6593_v36  ;;  %4362 = vmatpush1.bf16.msra.mxu1 %v6598_v33 }
 0x5d3   :  { %4322 = vmatprep.subr.bf16.mxu0 %v6607_v13  ;;  %4363 = vmatprep.subr.bf16.mxu1 %v6612_v25 }
 0x5d6   :  { %4323 = vmatpush1.bf16.msra.mxu0 %v6617_v19  ;;  %4364 = vmatpush1.bf16.msra.mxu1 %v6622_v3 }
 0x5d7   :  { %4324 = vmatprep.subr.bf16.mxu0 %v6631_v0  ;;  %4365 = vmatprep.subr.bf16.mxu1 %v6636_v11 }
 0x5da   :  { %4325 = vmatpush1.bf16.msra.mxu0 %v6641_v15  ;;  %4366 = vmatpush1.bf16.msra.mxu1 %v6646_v32 }
 0x5db   :  { %4326 = vmatprep.subr.bf16.mxu0 %v6655_v10  ;;  %4367 = vmatprep.subr.bf16.mxu1 %v6660_v37 }
 0x5de   :  { %4327 = vmatpush1.bf16.msra.mxu0 %v6665_v29  ;;  %4368 = vmatpush1.bf16.msra.mxu1 %v6670_v16 }
 0x5df   :  { %4328 = vmatprep.subr.bf16.mxu0 %v6679_v14  ;;  %4369 = vmatprep.subr.bf16.mxu1 %v6684_v6 }
 0x5e2   :  { %4329 = vmatpush1.bf16.msra.mxu0 %v6689_v20  ;;  %4370 = vmatpush1.bf16.msra.mxu1 %v6694_v21 }
 0x5e3   :  { %4330 = vmatprep.subr.bf16.mxu0 %v6703_v22  ;;  %4371 = vmatprep.subr.bf16.mxu1 %v6708_v23 }
 0x5e6   :  { %4331 = vmatpush1.bf16.msra.mxu0 %v6713_v26  ;;  %4372 = vmatpush1.bf16.msra.mxu1 %v6718_v27 }
 0x5e7   :  { %4332 = vmatprep.subr.bf16.mxu0 %v6727_v30  ;;  %4373 = vmatprep.subr.bf16.mxu1 %v6732_v31 }
 0x5ea   :  { %4333 = vmatpush1.bf16.msra.mxu0 %v6737_v34  ;;  %4374 = vmatpush1.bf16.msra.mxu1 %v6742_v35 }
 0x5eb   :  { %4621 = vmatprep.subr.bf16.mxu0 %v6559_v5  ;;  %4662 = vmatprep.subr.bf16.mxu1 %v6564_v8 }
 0x68d   :  { %v4049_v38 = vpop.f32.mrf.mxu0  ;;  %v4090_v39 = vpop.f32.mrf.mxu1 }
 0x68e   :  { %v4097_v43 = vadd.f32 %v4049_v38, %v1688_v18  ;;  %v4099_v8 = vadd.f32 %v4090_v39, %v1729_v48 }
 0x68f   :  { %v4051_v41 = vpop.f32.mrf.mxu0  ;;  %v4092_v45 = vpop.f32.mrf.mxu1 }
 0x690   :  { %v4101_v46 = vmul.f32 0.5, %v4097_v43  ;;  %v4098_v49 = vadd.f32 %v4051_v41, %v1690_v42  ;;  %v4100_v53 = vadd.f32 %v4092_v45, %v1731_v55 }
 0x691   :  { %v4053_v50 = vpop.f32.mrf.mxu0  ;;  %v4094_v5 = vpop.f32.mrf.mxu1 }
 0x692   :  { %5510 = vtanh.f32 %v4101_v46  ;;  %v4105_v60 = vmul.f32 0.5, %v4098_v49  ;;  %v4110_v57 = vmul.f32 0.5, %v4100_v53 }
 0x693   :  { %v4054_v51 = vpop.f32.mrf.mxu0  ;;  %v4095_v52 = vpop.f32.mrf.mxu1 }
 0x694   :  { %5512 = vtanh.f32 %v4105_v60  ;;  %v6972_v52 = vld [vmem:[#allocation23_spill] sm:$0xff] }
 0x695   :  { %5514 = vtanh.f32 %v4099_v8  ;;  %v2250_v54 = vadd.f32 %v6972_v52, %v6433_v59 }
 0x696   :  { %5516 = vtanh.f32 %v4110_v57  ;;  %v6973_v57 = vld [vmem:[#allocation25_spill] sm:$0xff] }
 0x69f   :  { %v5511_v2 = vpop.eup %5510 }
 0x6a0   :  { %v4103_v7 = vadd.f32 1.0, %v5511_v2  ;;  %v2252_v2 = vadd.f32 %v6973_v57, %v6435_v4 }
 0x6a1   :  { %v5513_v62 = vpop.eup %5512 }
 0x6a2   :  { %v4104_v63 = vmul.f32 0.5, %v4103_v7  ;;  %v4107_v17 = vadd.f32 1.0, %v5513_v62  ;;  %v5515_v44 = vpop.eup %5514 }
 0x6a3   :  { %v5517_v42 = vpop.eup %5516 }
 0x6a4   :  { %v4108_v18 = vmul.f32 0.5, %v4107_v17  ;;  %v4115_v38 = vmul.f32 %v5515_v44, %v4104_v63  ;;  %v4112_v43 = vadd.f32 1.0, %v5517_v42  ;;  %v6974_v17 = vld [vmem:[#allocation24_spill] sm:$0xff] }
 0x6a5   :  { %v2291_v44 = vadd.f32 %v6974_v17, %v6439_v1 }
 0x6a6   :  { %v4114_v39 = vmul.f32 %v4108_v18, %v6808_v56  ;;  %v4113_v41 = vmul.f32 0.5, %v4112_v43 }
 0x6a8   :  { %v6857_v40 = vadd.f32 %v4115_v38, %v4114_v39 }
 0x6aa   :  { %5518 = vtanh.f32 %v6857_v40 }
 0x6b7   :  { %v5519_v45 = vpop.eup %5518 }
 0x6b8   :  { %v4118_v47 = vmul.f32 %v5519_v45, %v4113_v41  ;;  %v6975_v45 = vld [vmem:[#allocation26_spill] sm:$0xff] }
 0x6ba   :  { %5200 = vst [vmem:[%s6927_s6 + $0x28] sm:$0xff] %v4118_v47  ;;  %v4125_v48 = vpack.c.bf16 %v4118_v47, %v4118_v47 }
 0x6bc   :  { %4351 = vmatmul.mubr.bf16.vlgmr.msra.gmra.mxu0 %v4125_v48  ;;  %4392 = vmatmul.mubr.bf16.vlgmr.msra.gmra.mxu1 %v4125_v48 }
 0x6bd   :  { %4622 = vmatpush1.bf16.msra.mxu0 %v6569_v24  ;;  %4663 = vmatpush1.bf16.msra.mxu1 %v6574_v28 }
 0x6be   :  { %4623 = vmatprep.subr.bf16.mxu0 %v6583_v58  ;;  %4664 = vmatprep.subr.bf16.mxu1 %v6588_v12  ;;  %v6969_v12 = vld [vmem:[#allocation21_spill] sm:$0xff] }
 0x6bf   :  { %4653 = vmatprep.mubr.bf16.mxu0 %v6953_v9  ;;  %4694 = vmatprep.mubr.bf16.mxu1 %v6953_v9  ;;  %v6968_v9 = vld [vmem:[#allocation19_spill] sm:$0xff] }
 0x6c0   :  { %v1969_v24 = vadd.f32 %v6968_v9, %v6433_v59 }
 0x6c1   :  { %4624 = vmatpush1.bf16.msra.mxu0 %v6593_v36  ;;  %4665 = vmatpush1.bf16.msra.mxu1 %v6598_v33  ;;  %v1971_v36 = vadd.f32 %v6969_v12, %v6435_v4  ;;  %v2293_v4 = vadd.f32 %v6975_v45, %v6445_v61 }
 0x6c2   :  { %4625 = vmatprep.subr.bf16.mxu0 %v6607_v13  ;;  %4666 = vmatprep.subr.bf16.mxu1 %v6612_v25 }
 0x6c5   :  { %4626 = vmatpush1.bf16.msra.mxu0 %v6617_v19  ;;  %4667 = vmatpush1.bf16.msra.mxu1 %v6622_v3  ;;  %v6970_v19 = vld [vmem:[#allocation20_spill] sm:$0xff] }
 0x6c6   :  { %4627 = vmatprep.subr.bf16.mxu0 %v6631_v0  ;;  %4668 = vmatprep.subr.bf16.mxu1 %v6636_v11  ;;  %v2010_v3 = vadd.f32 %v6970_v19, %v6439_v1 }
 0x6c9   :  { %4628 = vmatpush1.bf16.msra.mxu0 %v6641_v15  ;;  %4669 = vmatpush1.bf16.msra.mxu1 %v6646_v32 }
 0x6ca   :  { %4629 = vmatprep.subr.bf16.mxu0 %v6655_v10  ;;  %4670 = vmatprep.subr.bf16.mxu1 %v6660_v37 }
 0x6cd   :  { %4630 = vmatpush1.bf16.msra.mxu0 %v6665_v29  ;;  %4671 = vmatpush1.bf16.msra.mxu1 %v6670_v16 }
 0x6ce   :  { %4631 = vmatprep.subr.bf16.mxu0 %v6679_v14  ;;  %4672 = vmatprep.subr.bf16.mxu1 %v6684_v6  ;;  %v6971_v14 = vld [vmem:[#allocation22_spill] sm:$0xff] }
 0x6cf   :  { %v2012_v6 = vadd.f32 %v6971_v14, %v6445_v61 }
 0x6d1   :  { %4632 = vmatpush1.bf16.msra.mxu0 %v6689_v20  ;;  %4673 = vmatpush1.bf16.msra.mxu1 %v6694_v21 }
 0x6d2   :  { %4633 = vmatprep.subr.bf16.mxu0 %v6703_v22  ;;  %4674 = vmatprep.subr.bf16.mxu1 %v6708_v23 }
 0x6d5   :  { %4634 = vmatpush1.bf16.msra.mxu0 %v6713_v26  ;;  %4675 = vmatpush1.bf16.msra.mxu1 %v6718_v27 }
 0x6d6   :  { %4635 = vmatprep.subr.bf16.mxu0 %v6727_v30  ;;  %4676 = vmatprep.subr.bf16.mxu1 %v6732_v31 }
 0x6d9   :  { %4636 = vmatpush1.bf16.msra.mxu0 %v6737_v34  ;;  %4677 = vmatpush1.bf16.msra.mxu1 %v6742_v35 }
 0x77c   :  { %v4352_v28 = vpop.f32.mrf.mxu0  ;;  %v4393_v58 = vpop.f32.mrf.mxu1 }
 0x77d   :  { %v4400_v33 = vadd.f32 %v4352_v28, %v1969_v24  ;;  %v4402_v10 = vadd.f32 %v4393_v58, %v2010_v3 }
 0x77e   :  { %v4354_v13 = vpop.f32.mrf.mxu0  ;;  %v4395_v25 = vpop.f32.mrf.mxu1 }
 0x77f   :  { %v4404_v0 = vmul.f32 0.5, %v4400_v33  ;;  %v4401_v11 = vadd.f32 %v4354_v13, %v1971_v36  ;;  %v4403_v20 = vadd.f32 %v4395_v25, %v2012_v6 }
 0x780   :  { %v4356_v15 = vpop.f32.mrf.mxu0  ;;  %v4397_v32 = vpop.f32.mrf.mxu1 }
 0x781   :  { %5520 = vtanh.f32 %v4404_v0  ;;  %v4408_v37 = vmul.f32 0.5, %v4401_v11  ;;  %v4413_v21 = vmul.f32 0.5, %v4403_v20 }
 0x782   :  { %v4357_v29 = vpop.f32.mrf.mxu0  ;;  %v4398_v16 = vpop.f32.mrf.mxu1 }
 0x783   :  { %5522 = vtanh.f32 %v4408_v37 }
 0x784   :  { %5524 = vtanh.f32 %v4402_v10 }
 0x785   :  { %5526 = vtanh.f32 %v4413_v21 }
 0x78e   :  { %v5521_v22 = vpop.eup %5520 }
 0x78f   :  { %v4406_v23 = vadd.f32 1.0, %v5521_v22 }
 0x790   :  { %v5523_v26 = vpop.eup %5522 }
 0x791   :  { %v4407_v27 = vmul.f32 0.5, %v4406_v23  ;;  %v4410_v30 = vadd.f32 1.0, %v5523_v26  ;;  %v5525_v31 = vpop.eup %5524 }
 0x792   :  { %v5527_v49 = vpop.eup %5526 }
 0x793   :  { %v4411_v34 = vmul.f32 0.5, %v4410_v30  ;;  %v4418_v35 = vmul.f32 %v5525_v31, %v4407_v27  ;;  %v4415_v50 = vadd.f32 1.0, %v5527_v49 }
 0x795   :  { %v4417_v56 = vmul.f32 %v4411_v34, %v6857_v40  ;;  %v4416_v5 = vmul.f32 0.5, %v4415_v50 }
 0x797   :  { %v4419_v46 = vadd.f32 %v4418_v35, %v4417_v56 }
 0x799   :  { %5528 = vtanh.f32 %v4419_v46 }
 0x7a6   :  { %v5529_v8 = vpop.eup %5528 }
 0x7a7   :  { %v4421_v60 = vmul.f32 %v5529_v8, %v4416_v5 }
 0x7a9   :  { %5233 = vst [vmem:[%s6927_s6 + $0x30] sm:$0xff] %v4421_v60  ;;  %v4428_v51 = vpack.c.bf16 %v4421_v60, %v4421_v60 }
 0x7ab   :  { %4654 = vmatmul.mubr.bf16.vlgmr.msra.gmra.mxu0 %v4428_v51  ;;  %4695 = vmatmul.mubr.bf16.vlgmr.msra.gmra.mxu1 %v4428_v51 }
 0x86b   :  { %v4655_v55 = vpop.f32.mrf.mxu0  ;;  %v4696_v53 = vpop.f32.mrf.mxu1 }
 0x86c   :  { %v4703_v7 = vadd.f32 %v4655_v55, %v2250_v54  ;;  %v4705_v42 = vadd.f32 %v4696_v53, %v2291_v44 }
 0x86d   :  { %v4657_v62 = vpop.f32.mrf.mxu0  ;;  %v4698_v63 = vpop.f32.mrf.mxu1 }
 0x86e   :  { %v4707_v18 = vmul.f32 0.5, %v4703_v7  ;;  %v4704_v38 = vadd.f32 %v4657_v62, %v2252_v2  ;;  %v4706_v47 = vadd.f32 %v4698_v63, %v2293_v4 }
 0x86f   :  { %v4659_v39 = vpop.f32.mrf.mxu0  ;;  %v4700_v40 = vpop.f32.mrf.mxu1 }
 0x870   :  { %5530 = vtanh.f32 %v4707_v18  ;;  %v4711_v43 = vmul.f32 0.5, %v4704_v38  ;;  %v4716_v48 = vmul.f32 0.5, %v4706_v47 }
 0x871   :  { %v4660_v41 = vpop.f32.mrf.mxu0  ;;  %v4701_v59 = vpop.f32.mrf.mxu1 }
 0x872   :  { %5532 = vtanh.f32 %v4711_v43 }
 0x873   :  { %5534 = vtanh.f32 %v4705_v42 }
 0x874   :  { %5536 = vtanh.f32 %v4716_v48 }
 0x87d   :  { %v5531_v9 = vpop.eup %5530 }
 0x87e   :  { %v4709_v24 = vadd.f32 1.0, %v5531_v9 }
 0x87f   :  { %v5533_v28 = vpop.eup %5532 }
 0x880   :  { %v4710_v1 = vmul.f32 0.5, %v4709_v24  ;;  %v4713_v58 = vadd.f32 1.0, %v5533_v28  ;;  %v5535_v12 = vpop.eup %5534 }
 0x881   :  { %v5537_v19 = vpop.eup %5536 }
 0x882   :  { %v4714_v36 = vmul.f32 0.5, %v4713_v58  ;;  %v4721_v33 = vmul.f32 %v5535_v12, %v4710_v1  ;;  %v4718_v61 = vadd.f32 1.0, %v5537_v19 }
 0x884   :  { %v4720_v13 = vmul.f32 %v4714_v36, %v4419_v46  ;;  %v4719_v3 = vmul.f32 0.5, %v4718_v61 }
 0x886   :  { %v4722_v25 = vadd.f32 %v4721_v33, %v4720_v13 }
 0x888   :  { %5538 = vtanh.f32 %v4722_v25  ;;  %4732 = vst [vmem:[%s6928_s7] sm:$0xff] %v4722_v25 }
 0x895   :  { %v5539_v0 = vpop.eup %5538 }
 0x896   :  { %v4724_v11 = vmul.f32 %v5539_v0, %v4719_v3 }
 0x898   :  { %5266 = vst [vmem:[%s6927_s6 + $0x38] sm:$0xff] %v4724_v11 }

</bundles_post_ra>
